<compile_context>
chip_gen: v6e
topology: v6e:2x2x1
jax: 0.10.0
libtpu: 0.0.40
codegen_flags: <defaults>
</compile_context>

<pallas_src>
import functools

import jax
import jax.numpy as jnp
from jax.experimental import pallas as pl
from jax.experimental.pallas import tpu as pltpu

HSI_LEN = 220
CLA_NUM = 16
BN_EPS = 1e-5
PAD = 128          # lane margin in the staging scratch (>= max tap shift, aligned stores)


# ----------------------------------------------------------------------------
# Static geometry bookkeeping.
# ----------------------------------------------------------------------------
def _geometry(x_shape, layer_list):
    """Per-layer (cin, cout, kh, kw, w_in, w_out); universal frame width and size."""
    n, c0, h, w = x_shape
    metas = []
    cin = c0
    for li, cout in enumerate(layer_list):
        kh, kw = (3, 3) if li == 0 else (3, 1)
        w_out = w + 3 - kw          # padding (1,1), stride 1, H preserved
        metas.append((cin, cout, kh, kw, w, w_out))
        cin, w = cout, w_out
    wpu = w + 2                     # universal frame width (final width + halo)
    f = (h + 2) * wpu               # flattened per-image frame size (lane dim)
    return metas, wpu, f


# ----------------------------------------------------------------------------
# Single fused kernel: the whole Net forward.
# ----------------------------------------------------------------------------
def _fused_net_kernel(*refs, metas, n, f, wpu, c_last):
    """refs layout:
         refs[0]                    x_frame   (C0*N, F)                VMEM
         refs[1+3l .. 3l+3]         W2_l (Cout*N, kh*kw*Cin*N),
                                    aff_l (Cout*N, 3)  [bias, scale, shift],
                                    mask_l (1, F)                      VMEM
         refs[1+3L]                 fc weight (C_last, F, 16)          VMEM
         refs[2+3L]                 fc bias   (1, 16)                  VMEM
         refs[3+3L]                 output    (N, 16)                  VMEM (out)
         refs[4+3L]                 staging scratch (Cmax*N, 2*PAD+F)  VMEM (scratch)
    """
    num_layers = len(metas)
    x_ref = refs[0]
    layer_refs = [refs[1 + 3 * l: 1 + 3 * (l + 1)] for l in range(num_layers)]
    wfc_ref, bfc_ref, o_ref, scr_ref = refs[1 + 3 * num_layers:]

    # Activation value: (Cin*N, F), zero outside the current data region.
    cur = x_ref[...].astype(jnp.float32)

    for l in range(num_layers):
        w2_ref, aff_ref, mask_ref = layer_refs[l]
        cin, cout, kh, kw, _, _ = metas[l]
        rin = cin * n

        # Stage the zero-haloed activation once (aligned lane offset PAD); each conv tap
        # is then a constant lane shift of the flattened frame.  Reads for valid output
        # positions never leave [PAD, PAD+F); garbage only feeds masked positions.
        scr_ref[0:rin, PAD:PAD + f] = cur

        taps = []
        for i in range(kh):
            for j in range(kw):
                s = (i - 1) * wpu + (j - 1)
                taps.append(scr_ref[0:rin, PAD + s:PAD + s + f])
        a_mat = taps[0] if len(taps) == 1 else jnp.concatenate(taps, axis=0)

        # Whole conv layer as one MXU matmul: (Cout*N, K) @ (K, F).
        y = jnp.dot(w2_ref[...], a_mat, preferred_element_type=jnp.float32)
        y = jnp.maximum(y + aff_ref[:, 0:1], 0.0)        # conv bias + ReLU (ReLU before BN)
        y = y * aff_ref[:, 1:2] + aff_ref[:, 2:3]        # eval-mode BatchNorm2d (folded affine)
        # Re-zero halo / out-of-image frame positions (exact zero-padding for next layer).
        cur = jnp.where(mask_ref[...] > 0.5, y, 0.0)

    # fc = Dropout(0.5) -> Linear.  Dropout is identity at inference.
    # TODO(synk): training-mode dropout mask is not implemented (inference only).
    # FC weight is pre-embedded into frame positions, so no in-kernel flatten is needed;
    # contraction runs on the MXU and the (N, 16) output is written with a single store.
    acc = jnp.zeros((n, CLA_NUM), jnp.float32)
    for c in range(c_last):
        acc = acc + jnp.dot(cur[c * n:(c + 1) * n, :], wfc_ref[c],
                            preferred_element_type=jnp.float32)
    o_ref[...] = (acc + bfc_ref[...]).astype(o_ref.dtype)


# ----------------------------------------------------------------------------
# One-time parameter preparation (BN folding, weight re-layout, masks).
# ----------------------------------------------------------------------------
def prepare_kernel_params(params, x_shape):
    n, c0, h, w0 = x_shape
    layer_list = [w.shape[0] for (w, *_rest) in params["convs"]]
    metas, wpu, f = _geometry(x_shape, layer_list)
    eye_n = jnp.eye(n, dtype=jnp.float32)

    kp = {"w2": [], "aff": [], "mask": []}
    rows = jnp.arange(h + 2)
    cols = jnp.arange(wpu)
    for (w, b, gamma, beta, mean, var), meta in zip(params["convs"], metas):
        cin, cout, kh, kw, _w_in, w_out = meta
        s = gamma / jnp.sqrt(var + BN_EPS)
        t = beta - mean * s
        # Rows of the im2col operand are ordered ((i, j, c), n) -> weight = kron(M, I_N).
        m = jnp.transpose(w, (0, 2, 3, 1)).reshape(cout, kh * kw * cin)
        kp["w2"].append(jnp.kron(m, eye_n).astype(jnp.float32))
        aff = jnp.stack(
            [jnp.repeat(b, n), jnp.repeat(s, n), jnp.repeat(t, n)], axis=1)
        kp["aff"].append(aff.astype(jnp.float32))
        msk = (((rows >= 1) & (rows <= h))[:, None]
               & ((cols >= 1) & (cols <= w_out))[None, :])
        kp["mask"].append(msk.astype(jnp.float32).reshape(1, f))

    c_last = metas[-1][1]
    w_last = metas[-1][5]
    wfc4 = params["fc_w"].reshape(CLA_NUM, c_last, h, w_last)
    wemb = jnp.zeros((c_last, h + 2, wpu, CLA_NUM), jnp.float32)
    wemb = wemb.at[:, 1:1 + h, 1:1 + w_last, :].set(jnp.transpose(wfc4, (1, 2, 3, 0)))
    kp["fc_w"] = wemb.reshape(c_last, f, CLA_NUM)
    kp["fc_b"] = params["fc_b"].reshape(1, CLA_NUM).astype(jnp.float32)
    return kp


# ----------------------------------------------------------------------------
# Wrapper: layout plumbing + one fused pallas_call.
# ----------------------------------------------------------------------------
@jax.jit
def net_forward(x, kp):
    n, c0, h, w0 = x.shape
    layer_list = [int(a.shape[0]) // n for a in kp["aff"]]
    metas, wpu, f = _geometry(x.shape, layer_list)
    c_last = metas[-1][1]
    c_in_max = max(m[0] for m in metas)

    # Wrapper-side layout plumbing (tiny, one-time per call): embed x into the
    # zero-padded universal frame and flatten lane-dense to (C0*N, F).
    xp = jnp.pad(x.astype(jnp.float32),
                 ((0, 0), (0, 0), (1, 1), (1, wpu - 1 - w0)))
    x_frame = jnp.transpose(xp, (1, 0, 2, 3)).reshape(c0 * n, f)

    vmem = pl.BlockSpec(memory_space=pltpu.MemorySpace.VMEM)
    args = [x_frame]
    in_specs = [vmem]
    for l in range(len(layer_list)):
        args += [kp["w2"][l], kp["aff"][l], kp["mask"][l]]
        in_specs += [vmem, vmem, vmem]
    args += [kp["fc_w"], kp["fc_b"]]
    in_specs += [vmem, vmem]

    kernel = functools.partial(
        _fused_net_kernel, metas=tuple(metas), n=n, f=f, wpu=wpu, c_last=c_last)

    # TODO(synk): for large batches, tile N over a "parallel" grid axis (uses the second
    # TensorCore on v7x); at N=2 a single grid-less invocation is the right choice.
    return pl.pallas_call(
        kernel,
        out_shape=jax.ShapeDtypeStruct((n, CLA_NUM), x.dtype),
        in_specs=in_specs,
        out_specs=vmem,
        scratch_shapes=[pltpu.VMEM((c_in_max * n, 2 * PAD + f), jnp.float32)],
    )(*args)


# ----------------------------------------------------------------------------
# Parameter init (deterministic, synthetic).
# ----------------------------------------------------------------------------
def init_params(key, layer_list, fc_in):
    params = {"convs": []}
    in_ch = 3
    for li, out_ch in enumerate(layer_list):
        kh, kw = (3, 3) if li == 0 else (3, 1)
        key, k1, k2, k3, k4, k5, k6 = jax.random.split(key, 7)
        w = 0.1 * jax.random.normal(k1, (out_ch, in_ch, kh, kw), jnp.float32)
        b = 0.1 * jax.random.normal(k2, (out_ch,), jnp.float32)
        gamma = 1.0 + 0.1 * jax.random.normal(k3, (out_ch,), jnp.float32)
        beta = 0.1 * jax.random.normal(k4, (out_ch,), jnp.float32)
        mean = 0.1 * jax.random.normal(k5, (out_ch,), jnp.float32)
        var = 0.5 + jnp.abs(jax.random.normal(k6, (out_ch,), jnp.float32))
        params["convs"].append((w, b, gamma, beta, mean, var))
        in_ch = out_ch
    key, k1, k2 = jax.random.split(key, 3)
    params["fc_w"] = 0.05 * jax.random.normal(k1, (CLA_NUM, fc_in), jnp.float32)
    params["fc_b"] = 0.05 * jax.random.normal(k2, (CLA_NUM,), jnp.float32)
    return params


# ----------------------------------------------------------------------------
# Pure-JAX reference (verification only).
# ----------------------------------------------------------------------------
def ref_forward(x, params):
    h = x
    for (w, b, gamma, beta, mean, var) in params["convs"]:
        y = jax.lax.conv_general_dilated(
            h, w, window_strides=(1, 1), padding=((1, 1), (1, 1)),
            dimension_numbers=("NCHW", "OIHW", "NCHW"))
        y = y + b.reshape(1, -1, 1, 1)
        y = jnp.maximum(y, 0.0)
        s = gamma / jnp.sqrt(var + BN_EPS)
        t = beta - mean * s
        h = y * s.reshape(1, -1, 1, 1) + t.reshape(1, -1, 1, 1)
    h = h.reshape(h.shape[0], -1)
    return h @ params["fc_w"].T + params["fc_b"]


if __name__ == "__main__":
    layer_list = [4, 4, 4]               # len==3 branch of Net.__init__
    fc_in = HSI_LEN * layer_list[-1]     # Linear(hsi_len * layerList[2], 16) = Linear(880, 16)

    key = jax.random.PRNGKey(0)
    key, kx = jax.random.split(key)
    # (N=2, C=3, H=22, W=6): conv1 keeps 22x6, conv2 -> 22x8, conv3 -> 22x10,
    # flatten = 4*22*10 = 880 = fc_in (consistent with the module's Linear size).
    x = jax.random.normal(kx, (2, 3, 22, 6), jnp.float32)

    params = init_params(key, layer_list, fc_in)
    kparams = prepare_kernel_params(params, x.shape)   # one-time constant prep

    out = jax.block_until_ready(net_forward(x, kparams))
    ref = jax.block_until_ready(ref_forward(x, params))

    assert out.shape == (2, CLA_NUM), out.shape
    assert jnp.allclose(out, ref, rtol=2e-3, atol=2e-3), (
        f"max abs err {jnp.max(jnp.abs(out - ref))}")
    print("KERNEL_OK")
</pallas_src>

<mosaic_0001>
module attributes {stable_mosaic.version = 11 : i64} {
  func.func @_fused_net_kernel(%arg0: memref<6x288xf32, #tpu.memory_space<vmem>>, %arg1: memref<8x54xf32, #tpu.memory_space<vmem>>, %arg2: memref<8x3xf32, #tpu.memory_space<vmem>>, %arg3: memref<1x288xf32, #tpu.memory_space<vmem>>, %arg4: memref<8x24xf32, #tpu.memory_space<vmem>>, %arg5: memref<8x3xf32, #tpu.memory_space<vmem>>, %arg6: memref<1x288xf32, #tpu.memory_space<vmem>>, %arg7: memref<8x24xf32, #tpu.memory_space<vmem>>, %arg8: memref<8x3xf32, #tpu.memory_space<vmem>>, %arg9: memref<1x288xf32, #tpu.memory_space<vmem>>, %arg10: memref<4x288x16xf32, #tpu.memory_space<vmem>>, %arg11: memref<1x16xf32, #tpu.memory_space<vmem>>, %arg12: memref<2x16xf32, #tpu.memory_space<vmem>>, %arg13: memref<8x544xf32, #tpu.memory_space<vmem>>) attributes {dimension_semantics = [], scalar_prefetch = 0 : i64, scratch_operands = 1 : i64, tpu.core_type = #tpu.core_type<tc>} {
    %c0 = arith.constant 0 : index
    %c0_0 = arith.constant 0 : index
    %0 = vector.load %arg0[%c0, %c0_0] : memref<6x288xf32, #tpu.memory_space<vmem>>, vector<6x288xf32>
    %c0_1 = arith.constant 0 : index
    %c128 = arith.constant 128 : index
    %1 = vector.load %arg13[%c0_1, %c128] : memref<8x544xf32, #tpu.memory_space<vmem>>, vector<6x288xf32>
    tpu.vector_store %arg13[%c0_1, %c128], %0 {strides = array<i32>} : memref<8x544xf32, #tpu.memory_space<vmem>>, vector<6x288xf32>,
    %c0_2 = arith.constant 0 : index
    %c115 = arith.constant 115 : index
    %2 = vector.load %arg13[%c0_2, %c115] : memref<8x544xf32, #tpu.memory_space<vmem>>, vector<6x288xf32>
    %c0_3 = arith.constant 0 : index
    %c116 = arith.constant 116 : index
    %3 = vector.load %arg13[%c0_3, %c116] : memref<8x544xf32, #tpu.memory_space<vmem>>, vector<6x288xf32>
    %c0_4 = arith.constant 0 : index
    %c117 = arith.constant 117 : index
    %4 = vector.load %arg13[%c0_4, %c117] : memref<8x544xf32, #tpu.memory_space<vmem>>, vector<6x288xf32>
    %c0_5 = arith.constant 0 : index
    %c127 = arith.constant 127 : index
    %5 = vector.load %arg13[%c0_5, %c127] : memref<8x544xf32, #tpu.memory_space<vmem>>, vector<6x288xf32>
    %c0_6 = arith.constant 0 : index
    %c128_7 = arith.constant 128 : index
    %6 = vector.load %arg13[%c0_6, %c128_7] : memref<8x544xf32, #tpu.memory_space<vmem>>, vector<6x288xf32>
    %c0_8 = arith.constant 0 : index
    %c129 = arith.constant 129 : index
    %7 = vector.load %arg13[%c0_8, %c129] : memref<8x544xf32, #tpu.memory_space<vmem>>, vector<6x288xf32>
    %c0_9 = arith.constant 0 : index
    %c139 = arith.constant 139 : index
    %8 = vector.load %arg13[%c0_9, %c139] : memref<8x544xf32, #tpu.memory_space<vmem>>, vector<6x288xf32>
    %c0_10 = arith.constant 0 : index
    %c140 = arith.constant 140 : index
    %9 = vector.load %arg13[%c0_10, %c140] : memref<8x544xf32, #tpu.memory_space<vmem>>, vector<6x288xf32>
    %c0_11 = arith.constant 0 : index
    %c141 = arith.constant 141 : index
    %10 = vector.load %arg13[%c0_11, %c141] : memref<8x544xf32, #tpu.memory_space<vmem>>, vector<6x288xf32>
    %11 = tpu.concatenate %2, %3, %4, %5, %6, %7, %8, %9, %10 in 0 : vector<6x288xf32>, vector<6x288xf32>, vector<6x288xf32>, vector<6x288xf32>, vector<6x288xf32>, vector<6x288xf32>, vector<6x288xf32>, vector<6x288xf32>, vector<6x288xf32> -> vector<54x288xf32>
    %c0_12 = arith.constant 0 : index
    %c0_13 = arith.constant 0 : index
    %12 = vector.load %arg1[%c0_12, %c0_13] : memref<8x54xf32, #tpu.memory_space<vmem>>, vector<8x54xf32>
    %cst = arith.constant dense<0.000000e+00> : vector<8x288xf32>
    %13 = tpu.matmul %12, %11, %cst {dimension_numbers = #tpu.dot_dimension_numbers<[1], [0], [0], [1], [0, 0, 1, 1], [], []>} : vector<8x54xf32>, vector<54x288xf32>, vector<8x288xf32> -> vector<8x288xf32>
    %c0_14 = arith.constant 0 : index
    %c0_15 = arith.constant 0 : index
    %14 = vector.load %arg2[%c0_14, %c0_15] : memref<8x3xf32, #tpu.memory_space<vmem>>, vector<8x1xf32>
    %15 = vector.broadcast %14 : vector<8x1xf32> to vector<8x288xf32>
    %16 = arith.addf %13, %15 : vector<8x288xf32>
    %cst_16 = arith.constant 0.000000e+00 : f32
    %17 = vector.broadcast %cst_16 : f32 to vector<8x288xf32>
    %18 = arith.maximumf %16, %17 : vector<8x288xf32>
    %c0_17 = arith.constant 0 : index
    %c1 = arith.constant 1 : index
    %19 = vector.load %arg2[%c0_17, %c1] : memref<8x3xf32, #tpu.memory_space<vmem>>, vector<8x1xf32>
    %20 = vector.broadcast %19 : vector<8x1xf32> to vector<8x288xf32>
    %21 = arith.mulf %18, %20 : vector<8x288xf32>
    %c0_18 = arith.constant 0 : index
    %c2 = arith.constant 2 : index
    %22 = vector.load %arg2[%c0_18, %c2] : memref<8x3xf32, #tpu.memory_space<vmem>>, vector<8x1xf32>
    %23 = vector.broadcast %22 : vector<8x1xf32> to vector<8x288xf32>
    %24 = arith.addf %21, %23 : vector<8x288xf32>
    %c0_19 = arith.constant 0 : index
    %c0_20 = arith.constant 0 : index
    %25 = vector.load %arg3[%c0_19, %c0_20] : memref<1x288xf32, #tpu.memory_space<vmem>>, vector<1x288xf32>
    %cst_21 = arith.constant 5.000000e-01 : f32
    %26 = vector.broadcast %cst_21 : f32 to vector<1x288xf32>
    %27 = arith.cmpf ogt, %25, %26 : vector<1x288xf32>
    %cst_22 = arith.constant 0.000000e+00 : f32
    %28 = vector.shape_cast %27 : vector<1x288xi1> to vector<1x288xi1>
    %29 = vector.broadcast %28 : vector<1x288xi1> to vector<8x288xi1>
    %30 = vector.broadcast %cst_22 : f32 to vector<8x288xf32>
    %31 = arith.select %29, %24, %30 : vector<8x288xi1>, vector<8x288xf32>
    %c0_23 = arith.constant 0 : index
    %c128_24 = arith.constant 128 : index
    %32 = vector.load %arg13[%c0_23, %c128_24] : memref<8x544xf32, #tpu.memory_space<vmem>>, vector<8x288xf32>
    tpu.vector_store %arg13[%c0_23, %c128_24], %31 {strides = array<i32>} : memref<8x544xf32, #tpu.memory_space<vmem>>, vector<8x288xf32>,
    %c0_25 = arith.constant 0 : index
    %c115_26 = arith.constant 115 : index
    %33 = vector.load %arg13[%c0_25, %c115_26] : memref<8x544xf32, #tpu.memory_space<vmem>>, vector<8x288xf32>
    %c0_27 = arith.constant 0 : index
    %c127_28 = arith.constant 127 : index
    %34 = vector.load %arg13[%c0_27, %c127_28] : memref<8x544xf32, #tpu.memory_space<vmem>>, vector<8x288xf32>
    %c0_29 = arith.constant 0 : index
    %c139_30 = arith.constant 139 : index
    %35 = vector.load %arg13[%c0_29, %c139_30] : memref<8x544xf32, #tpu.memory_space<vmem>>, vector<8x288xf32>
    %36 = tpu.concatenate %33, %34, %35 in 0 : vector<8x288xf32>, vector<8x288xf32>, vector<8x288xf32> -> vector<24x288xf32>
    %c0_31 = arith.constant 0 : index
    %c0_32 = arith.constant 0 : index
    %37 = vector.load %arg4[%c0_31, %c0_32] : memref<8x24xf32, #tpu.memory_space<vmem>>, vector<8x24xf32>
    %cst_33 = arith.constant dense<0.000000e+00> : vector<8x288xf32>
    %38 = tpu.matmul %37, %36, %cst_33 {dimension_numbers = #tpu.dot_dimension_numbers<[1], [0], [0], [1], [0, 0, 1, 1], [], []>} : vector<8x24xf32>, vector<24x288xf32>, vector<8x288xf32> -> vector<8x288xf32>
    %c0_34 = arith.constant 0 : index
    %c0_35 = arith.constant 0 : index
    %39 = vector.load %arg5[%c0_34, %c0_35] : memref<8x3xf32, #tpu.memory_space<vmem>>, vector<8x1xf32>
    %40 = vector.broadcast %39 : vector<8x1xf32> to vector<8x288xf32>
    %41 = arith.addf %38, %40 : vector<8x288xf32>
    %cst_36 = arith.constant 0.000000e+00 : f32
    %42 = vector.broadcast %cst_36 : f32 to vector<8x288xf32>
    %43 = arith.maximumf %41, %42 : vector<8x288xf32>
    %c0_37 = arith.constant 0 : index
    %c1_38 = arith.constant 1 : index
    %44 = vector.load %arg5[%c0_37, %c1_38] : memref<8x3xf32, #tpu.memory_space<vmem>>, vector<8x1xf32>
    %45 = vector.broadcast %44 : vector<8x1xf32> to vector<8x288xf32>
    %46 = arith.mulf %43, %45 : vector<8x288xf32>
    %c0_39 = arith.constant 0 : index
    %c2_40 = arith.constant 2 : index
    %47 = vector.load %arg5[%c0_39, %c2_40] : memref<8x3xf32, #tpu.memory_space<vmem>>, vector<8x1xf32>
    %48 = vector.broadcast %47 : vector<8x1xf32> to vector<8x288xf32>
    %49 = arith.addf %46, %48 : vector<8x288xf32>
    %c0_41 = arith.constant 0 : index
    %c0_42 = arith.constant 0 : index
    %50 = vector.load %arg6[%c0_41, %c0_42] : memref<1x288xf32, #tpu.memory_space<vmem>>, vector<1x288xf32>
    %cst_43 = arith.constant 5.000000e-01 : f32
    %51 = vector.broadcast %cst_43 : f32 to vector<1x288xf32>
    %52 = arith.cmpf ogt, %50, %51 : vector<1x288xf32>
    %cst_44 = arith.constant 0.000000e+00 : f32
    %53 = vector.shape_cast %52 : vector<1x288xi1> to vector<1x288xi1>
    %54 = vector.broadcast %53 : vector<1x288xi1> to vector<8x288xi1>
    %55 = vector.broadcast %cst_44 : f32 to vector<8x288xf32>
    %56 = arith.select %54, %49, %55 : vector<8x288xi1>, vector<8x288xf32>
    %c0_45 = arith.constant 0 : index
    %c128_46 = arith.constant 128 : index
    %57 = vector.load %arg13[%c0_45, %c128_46] : memref<8x544xf32, #tpu.memory_space<vmem>>, vector<8x288xf32>
    tpu.vector_store %arg13[%c0_45, %c128_46], %56 {strides = array<i32>} : memref<8x544xf32, #tpu.memory_space<vmem>>, vector<8x288xf32>,
    %c0_47 = arith.constant 0 : index
    %c115_48 = arith.constant 115 : index
    %58 = vector.load %arg13[%c0_47, %c115_48] : memref<8x544xf32, #tpu.memory_space<vmem>>, vector<8x288xf32>
    %c0_49 = arith.constant 0 : index
    %c127_50 = arith.constant 127 : index
    %59 = vector.load %arg13[%c0_49, %c127_50] : memref<8x544xf32, #tpu.memory_space<vmem>>, vector<8x288xf32>
    %c0_51 = arith.constant 0 : index
    %c139_52 = arith.constant 139 : index
    %60 = vector.load %arg13[%c0_51, %c139_52] : memref<8x544xf32, #tpu.memory_space<vmem>>, vector<8x288xf32>
    %61 = tpu.concatenate %58, %59, %60 in 0 : vector<8x288xf32>, vector<8x288xf32>, vector<8x288xf32> -> vector<24x288xf32>
    %c0_53 = arith.constant 0 : index
    %c0_54 = arith.constant 0 : index
    %62 = vector.load %arg7[%c0_53, %c0_54] : memref<8x24xf32, #tpu.memory_space<vmem>>, vector<8x24xf32>
    %cst_55 = arith.constant dense<0.000000e+00> : vector<8x288xf32>
    %63 = tpu.matmul %62, %61, %cst_55 {dimension_numbers = #tpu.dot_dimension_numbers<[1], [0], [0], [1], [0, 0, 1, 1], [], []>} : vector<8x24xf32>, vector<24x288xf32>, vector<8x288xf32> -> vector<8x288xf32>
    %c0_56 = arith.constant 0 : index
    %c0_57 = arith.constant 0 : index
    %64 = vector.load %arg8[%c0_56, %c0_57] : memref<8x3xf32, #tpu.memory_space<vmem>>, vector<8x1xf32>
    %65 = vector.broadcast %64 : vector<8x1xf32> to vector<8x288xf32>
    %66 = arith.addf %63, %65 : vector<8x288xf32>
    %cst_58 = arith.constant 0.000000e+00 : f32
    %67 = vector.broadcast %cst_58 : f32 to vector<8x288xf32>
    %68 = arith.maximumf %66, %67 : vector<8x288xf32>
    %c0_59 = arith.constant 0 : index
    %c1_60 = arith.constant 1 : index
    %69 = vector.load %arg8[%c0_59, %c1_60] : memref<8x3xf32, #tpu.memory_space<vmem>>, vector<8x1xf32>
    %70 = vector.broadcast %69 : vector<8x1xf32> to vector<8x288xf32>
    %71 = arith.mulf %68, %70 : vector<8x288xf32>
    %c0_61 = arith.constant 0 : index
    %c2_62 = arith.constant 2 : index
    %72 = vector.load %arg8[%c0_61, %c2_62] : memref<8x3xf32, #tpu.memory_space<vmem>>, vector<8x1xf32>
    %73 = vector.broadcast %72 : vector<8x1xf32> to vector<8x288xf32>
    %74 = arith.addf %71, %73 : vector<8x288xf32>
    %c0_63 = arith.constant 0 : index
    %c0_64 = arith.constant 0 : index
    %75 = vector.load %arg9[%c0_63, %c0_64] : memref<1x288xf32, #tpu.memory_space<vmem>>, vector<1x288xf32>
    %cst_65 = arith.constant 5.000000e-01 : f32
    %76 = vector.broadcast %cst_65 : f32 to vector<1x288xf32>
    %77 = arith.cmpf ogt, %75, %76 : vector<1x288xf32>
    %cst_66 = arith.constant 0.000000e+00 : f32
    %78 = vector.shape_cast %77 : vector<1x288xi1> to vector<1x288xi1>
    %79 = vector.broadcast %78 : vector<1x288xi1> to vector<8x288xi1>
    %80 = vector.broadcast %cst_66 : f32 to vector<8x288xf32>
    %81 = arith.select %79, %74, %80 : vector<8x288xi1>, vector<8x288xf32>
    %cst_67 = arith.constant 0.000000e+00 : f32
    %82 = vector.broadcast %cst_67 : f32 to vector<2x16xf32>
    %83 = vector.extract_strided_slice %81 {offsets = [0, 0], sizes = [2, 288], strides = [1, 1]} : vector<8x288xf32> to vector<2x288xf32>
    %c0_68 = arith.constant 0 : index
    %c0_69 = arith.constant 0 : index
    %c0_70 = arith.constant 0 : index
    %84 = vector.load %arg10[%c0_68, %c0_69, %c0_70] : memref<4x288x16xf32, #tpu.memory_space<vmem>>, vector<1x288x16xf32>
    %85 = vector.shape_cast %84 : vector<1x288x16xf32> to vector<288x16xf32>
    %cst_71 = arith.constant dense<0.000000e+00> : vector<2x16xf32>
    %86 = tpu.matmul %83, %85, %cst_71 {dimension_numbers = #tpu.dot_dimension_numbers<[1], [0], [0], [1], [0, 0, 1, 1], [], []>} : vector<2x288xf32>, vector<288x16xf32>, vector<2x16xf32> -> vector<2x16xf32>
    %87 = arith.addf %82, %86 : vector<2x16xf32>
    %88 = vector.extract_strided_slice %81 {offsets = [2, 0], sizes = [2, 288], strides = [1, 1]} : vector<8x288xf32> to vector<2x288xf32>
    %c1_72 = arith.constant 1 : index
    %c0_73 = arith.constant 0 : index
    %c0_74 = arith.constant 0 : index
    %89 = vector.load %arg10[%c1_72, %c0_73, %c0_74] : memref<4x288x16xf32, #tpu.memory_space<vmem>>, vector<1x288x16xf32>
    %90 = vector.shape_cast %89 : vector<1x288x16xf32> to vector<288x16xf32>
    %cst_75 = arith.constant dense<0.000000e+00> : vector<2x16xf32>
    %91 = tpu.matmul %88, %90, %cst_75 {dimension_numbers = #tpu.dot_dimension_numbers<[1], [0], [0], [1], [0, 0, 1, 1], [], []>} : vector<2x288xf32>, vector<288x16xf32>, vector<2x16xf32> -> vector<2x16xf32>
    %92 = arith.addf %87, %91 : vector<2x16xf32>
    %93 = vector.extract_strided_slice %81 {offsets = [4, 0], sizes = [2, 288], strides = [1, 1]} : vector<8x288xf32> to vector<2x288xf32>
    %c2_76 = arith.constant 2 : index
    %c0_77 = arith.constant 0 : index
    %c0_78 = arith.constant 0 : index
    %94 = vector.load %arg10[%c2_76, %c0_77, %c0_78] : memref<4x288x16xf32, #tpu.memory_space<vmem>>, vector<1x288x16xf32>
    %95 = vector.shape_cast %94 : vector<1x288x16xf32> to vector<288x16xf32>
    %cst_79 = arith.constant dense<0.000000e+00> : vector<2x16xf32>
    %96 = tpu.matmul %93, %95, %cst_79 {dimension_numbers = #tpu.dot_dimension_numbers<[1], [0], [0], [1], [0, 0, 1, 1], [], []>} : vector<2x288xf32>, vector<288x16xf32>, vector<2x16xf32> -> vector<2x16xf32>
    %97 = arith.addf %92, %96 : vector<2x16xf32>
    %98 = vector.extract_strided_slice %81 {offsets = [6, 0], sizes = [2, 288], strides = [1, 1]} : vector<8x288xf32> to vector<2x288xf32>
    %c3 = arith.constant 3 : index
    %c0_80 = arith.constant 0 : index
    %c0_81 = arith.constant 0 : index
    %99 = vector.load %arg10[%c3, %c0_80, %c0_81] : memref<4x288x16xf32, #tpu.memory_space<vmem>>, vector<1x288x16xf32>
    %100 = vector.shape_cast %99 : vector<1x288x16xf32> to vector<288x16xf32>
    %cst_82 = arith.constant dense<0.000000e+00> : vector<2x16xf32>
    %101 = tpu.matmul %98, %100, %cst_82 {dimension_numbers = #tpu.dot_dimension_numbers<[1], [0], [0], [1], [0, 0, 1, 1], [], []>} : vector<2x288xf32>, vector<288x16xf32>, vector<2x16xf32> -> vector<2x16xf32>
    %102 = arith.addf %97, %101 : vector<2x16xf32>
    %c0_83 = arith.constant 0 : index
    %c0_84 = arith.constant 0 : index
    %103 = vector.load %arg11[%c0_83, %c0_84] : memref<1x16xf32, #tpu.memory_space<vmem>>, vector<1x16xf32>
    %104 = vector.broadcast %103 : vector<1x16xf32> to vector<2x16xf32>
    %105 = arith.addf %102, %104 : vector<2x16xf32>
    %c0_85 = arith.constant 0 : index
    %c0_86 = arith.constant 0 : index
    %106 = vector.load %arg12[%c0_85, %c0_86] : memref<2x16xf32, #tpu.memory_space<vmem>>, vector<2x16xf32>
    tpu.vector_store %arg12[%c0_85, %c0_86], %105 {strides = array<i32>} : memref<2x16xf32, #tpu.memory_space<vmem>>, vector<2x16xf32>,
    return
  }
}

</mosaic_0001>

<bundles_post_ra>
// kernel: net_forward.1
= control target key start
LH: loop header
LB: loop body
LE: loop exit
PB: predicated region body
PF: predicated region fallthrough
CT: control target
= control target key end

     0   :  { %vm47_vm0 = vcmask 259072   ;;  %s3103_s0 = inlined_call_operand.vmem [shape: f32[6,288], index: 0, kind: input, shape index: {}]   ;;  %s3104_s1 = inlined_call_operand.vmem [shape: f32[8,54], index: 1, kind: input, shape index: {}]   ;;  %s3105_s2 = inlined_call_operand.vmem [shape: f32[8,3], index: 2, kind: input, shape index: {}]   ;;  %s3106_s3 = inlined_call_operand.vmem [shape: f32[1,288], index: 3, kind: input, shape index: {}]   ;;  %s3107_s4 = inlined_call_operand.vmem [shape: f32[8,24], index: 4, kind: input, shape index: {}]   ;;  %s3108_s5 = inlined_call_operand.vmem [shape: f32[8,3], index: 5, kind: input, shape index: {}]   ;;  %s3109_s6 = inlined_call_operand.vmem [shape: f32[1,288], index: 6, kind: input, shape index: {}]   ;;  %s3110_s7 = inlined_call_operand.vmem [shape: f32[8,24], index: 7, kind: input, shape index: {}]   ;;  %s3111_s8 = inlined_call_operand.vmem [shape: f32[8,3], index: 8, kind: input, shape index: {}]   ;;  %s3112_s9 = inlined_call_operand.vmem [shape: f32[1,288], index: 9, kind: input, shape index: {}]   ;;  %s3113_s10 = inlined_call_operand.vmem [shape: f32[4,288,16], index: 10, kind: input, shape index: {}]   ;;  %s3114_s11 = inlined_call_operand.vmem [shape: f32[1,16], index: 11, kind: input, shape index: {}]   ;;  %s3115_s12 = inlined_call_operand.hbm [shape: f32[2,16], index: 12, kind: output, shape index: {}]  }
   0x1   :  { %v44_v0 = vld [vmem:[%s3103_s0 + $0x10] sm:$0x3f]  ;;  %v42_v1 = vld [vmem:[%s3103_s0] sm:$0x3f]  ;;  %v43_v2 = vld [vmem:[%s3103_s0 + $0x8] sm:$0x3f] }
   0x2   :  { %48 = vst.msk [vmem:[#allocation2 + $0x18] sm:$0x3f] %vm47_vm0, %v44_v0  ;;  %45 = vst [vmem:[#allocation2 + $0x8] sm:$0x3f] %v42_v1 }
   0x3   :  { %46 = vst [vmem:[#allocation2 + $0x10] sm:$0x3f] %v43_v2 }
   0x4   :  { %17 = vsyncpa [#allocation4], 0  ;;  %s2230_s27 = smov 102   ;;  %s2231_s28 = smov 104   ;;  %v2343_v15 = vld [vmem:[#allocation2] sm:$0x3f] }
   0x5   :  { %s2232_s0 = smov 103   ;;  %s2233_s29 = smov 114   ;;  %v77_v16 = vrot.slane %v2343_v15, 4  ;;  %v97_v17 = vrot.slane %v2343_v15, 6  ;;  %v57_v18 = vrot.slane %v2343_v15, 2  ;;  %v2238_v19 = vmov 0.0  }
   0x6   :  { %s2234_s30 = smov 115   ;;  %s2235_s13 = smov 126   ;;  %2104 = vmatprep.subr.mxu1 %v2238_v19  ;;  %406 = vmatprep.mubr.f32.mxu0 %v2238_v19  ;;  %vm175_vm1 = vcmask 834560   ;;  %vm188_vm2 = vcmask 1041408   ;;  %vm183_vm3 = vcmask 1043456   ;;  %vm178_vm4 = vcmask 1045504  }
   0x7   :  { %s2236_s14 = smov 116   ;;  %s2237_s15 = smov 127   ;;  %vm162_vm5 = vcmask 842752   ;;  %vm149_vm6 = vcmask 850944   ;;  %vm136_vm7 = vcmask 932864   ;;  %vm123_vm8 = vcmask 941056  }
   0x8   :  { %s2239_s16 = smov 13   ;;  %vm109_vm9 = vcmask 949248   ;;  %vm89_vm10 = vcmask 1031168   ;;  %vm69_vm11 = vcmask 1039360   ;;  %vm2240_vm12 = vmmov 0  }
   0x9   :  { %v2319_v3 = vld [vmem:[#allocation2 + $0x18] sm:$0x3f]  ;;  %v2321_v4 = vld [vmem:[#allocation2 + $0x8] sm:$0x3f]  ;;  %2118 = vmatprep.mubr.msk.f32.mxu1 %vm2240_vm12, %v2238_v19  ;;  %vm292_vm13 = vcmask 105472   ;;  %vm332_vm14 = vcmask 441344  }
   0xa   :  { %173 = vrot.lane.b32.xlu1 %v2319_v3, %s2230_s27  ;;  %169 = vrot.lane.b32.xlu0 %v2321_v4, %s2230_s27  ;;  %v78_v5 = vrot.slane %v2321_v4, 4  ;;  %v2326_v6 = vld [vmem:[#allocation2 + $0x10] sm:$0x3f]  ;;  %v80_v8 = vrot.slane %v2319_v3, 4  ;;  %v98_v9 = vrot.slane %v2321_v4, 6  ;;  %v100_v11 = vrot.slane %v2319_v3, 6 }
   0xb   :  { %v79_v7 = vrot.slane %v2326_v6, 4  ;;  %v99_v10 = vrot.slane %v2326_v6, 6  ;;  %v58_v12 = vrot.slane %v2321_v4, 2  ;;  %v59_v13 = vrot.slane %v2326_v6, 2 }
   0xc   :  { %v60_v14 = vrot.slane %v2319_v3, 2 }
   0xe   :  { %171 = vrot.lane.b32.xlu0 %v2326_v6, %s2230_s27  ;;  %143 = vrot.lane.b32.xlu1 %v78_v5, %s2231_s28 }
  0x12   :  { %145 = vrot.lane.b32.xlu0 %v79_v7, %s2231_s28  ;;  %147 = vrot.lane.b32.xlu1 %v80_v8, %s2231_s28 }
  0x16   :  { %156 = vrot.lane.b32.xlu0 %v98_v9, %s2232_s0  ;;  %158 = vrot.lane.b32.xlu1 %v99_v10, %s2232_s0 }
  0x1a   :  { %160 = vrot.lane.b32.xlu0 %v100_v11, %s2232_s0  ;;  %130 = vrot.lane.b32.xlu1 %v58_v12, %s2233_s29 }
  0x1e   :  { %132 = vrot.lane.b32.xlu0 %v59_v13, %s2233_s29  ;;  %134 = vrot.lane.b32.xlu1 %v60_v14, %s2233_s29 }
  0x22   :  { %117 = vrot.lane.b32.xlu0 %v2321_v4, %s2234_s30  ;;  %119 = vrot.lane.b32.xlu1 %v2326_v6, %s2234_s30 }
  0x26   :  { %121 = vrot.lane.b32.xlu0 %v2319_v3, %s2234_s30  ;;  %83 = vrot.lane.b32.xlu1 %v78_v5, %s2235_s13 }
  0x2a   :  { %85 = vrot.lane.b32.xlu0 %v79_v7, %s2235_s13  ;;  %87 = vrot.lane.b32.xlu1 %v80_v8, %s2235_s13 }
  0x2e   :  { %103 = vrot.lane.b32.xlu0 %v98_v9, %s2236_s14  ;;  %105 = vrot.lane.b32.xlu1 %v99_v10, %s2236_s14 }
  0x32   :  { %107 = vrot.lane.b32.xlu0 %v100_v11, %s2236_s14  ;;  %81 = vrot.lane.b32.xlu1 %v77_v16, %s2235_s13 }
  0x36   :  { %101 = vrot.lane.b32.xlu0 %v97_v17, %s2236_s14  ;;  %63 = vrot.lane.b32.xlu1 %v58_v12, %s2237_s15 }
  0x3a   :  { %65 = vrot.lane.b32.xlu0 %v59_v13, %s2237_s15  ;;  %67 = vrot.lane.b32.xlu1 %v60_v14, %s2237_s15 }
  0x3e   :  { %61 = vrot.lane.b32.xlu0 %v57_v18, %s2237_s15 }
  0x7c   :  { %v174_v20 = vpop.permute.xlu1 %173  ;;  %v170_v21 = vpop.permute.xlu0 %169 }
  0x7d   :  { %284 = vrot.lane.b32.xlu1 %v170_v21, %s2239_s16 }
  0x80   :  { %v172_v22 = vpop.permute.xlu0 %171  ;;  %v144_v23 = vpop.permute.xlu1 %143 }
  0x81   :  { %290 = vrot.lane.b32.xlu1 %v174_v20, %s2239_s16  ;;  %v177_v24 = vsel %vm175_vm1, %v172_v22, %v174_v20  ;;  %v176_v27 = vsel %vm175_vm1, %v170_v21, %v172_v22 }
  0x82   :  { %288 = vrot.lane.b32.xlu0 %v177_v24, %s2239_s16 }
  0x84   :  { %v146_v25 = vpop.permute.xlu0 %145  ;;  %v148_v26 = vpop.permute.xlu1 %147 }
  0x85   :  { %286 = vrot.lane.b32.xlu1 %v176_v27, %s2239_s16  ;;  %v150_v42 = vsel %vm149_vm6, %v144_v23, %v146_v25  ;;  %v151_v63 = vsel %vm149_vm6, %v146_v25, %v148_v26 }
  0x88   :  { %v157_v28 = vpop.permute.xlu0 %156  ;;  %v159_v29 = vpop.permute.xlu1 %158 }
  0x89   :  { %v201_v30 = vsel %vm188_vm2, %v144_v23, %v157_v28  ;;  %v163_v41 = vsel %vm162_vm5, %v157_v28, %v159_v29  ;;  %v2241_v28 = vmov 1  }
  0x8a   :  { %276 = vrot.lane.b32.xlu0 %v201_v30, %s2239_s16  ;;  %v202_v45 = vsel %vm188_vm2, %v150_v42, %v163_v41 }
  0x8b   :  { %2199 = vset.pattern.permute.xlu0 %v2241_v28 }
  0x8c   :  { %v161_v31 = vpop.permute.xlu0 %160  ;;  %v131_v32 = vpop.permute.xlu1 %130 }
  0x8d   :  { %v204_v33 = vsel %vm188_vm2, %v148_v26, %v161_v31  ;;  %v197_v34 = vsel %vm183_vm3, %v131_v32, %v144_v23  ;;  %v164_v60 = vsel %vm162_vm5, %v159_v29, %v161_v31  ;;  %v2242_v29 = vmov 0   ;;  %v206_v31 = vld [vmem:[%s3105_s2] sm:$0xff]  ;;  %s2244_s2 = smov [#allocation3]  }
  0x8e   :  { %282 = vrot.lane.b32.xlu1 %v204_v33, %s2239_s16  ;;  %268 = vrot.lane.b32.xlu0 %v197_v34, %s2239_s16  ;;  %v203_v2 = vsel %vm188_vm2, %v151_v63, %v164_v60  ;;  %s1796_s19 = sshll.u32 %s2244_s2, 4  ;;  %s1797_s19 = int_to_ptr.vmem [resolvable:$true] %s1796_s19 }
  0x8f   :  { %2198 = vset.pattern.permute.xlu1 %v2242_v29  ;;  %p2213_p1 = scmp.lt.s32.totalorder %s1797_s19, %s1797_s19 }
  0x90   :  { %v133_v35 = vpop.permute.xlu0 %132  ;;  %v135_v36 = vpop.permute.xlu1 %134 }
  0x91   :  { %v200_v37 = vsel %vm183_vm3, %v135_v36, %v148_v26  ;;  %v137_v47 = vsel %vm136_vm7, %v131_v32, %v133_v35  ;;  %v138_v5 = vsel %vm136_vm7, %v133_v35, %v135_v36 }
  0x92   :  { %274 = vrot.lane.b32.xlu1 %v200_v37, %s2239_s16  ;;  %v198_v50 = vsel %vm183_vm3, %v137_v47, %v150_v42  ;;  %v199_v11 = vsel %vm183_vm3, %v138_v5, %v151_v63 }
  0x94   :  { %v118_v38 = vpop.permute.xlu0 %117  ;;  %v120_v39 = vpop.permute.xlu1 %119 }
  0x95   :  { %v193_v40 = vsel %vm178_vm4, %v118_v38, %v131_v32  ;;  %v124_v51 = vsel %vm123_vm8, %v118_v38, %v120_v39 }
  0x96   :  { %260 = vrot.lane.b32.xlu0 %v193_v40, %s2239_s16  ;;  %v194_v54 = vsel %vm178_vm4, %v124_v51, %v137_v47 }
  0x98   :  { %v122_v43 = vpop.permute.xlu0 %121  ;;  %v84_v44 = vpop.permute.xlu1 %83 }
  0x99   :  { %v196_v46 = vsel %vm178_vm4, %v122_v43, %v135_v36  ;;  %v125_v12 = vsel %vm123_vm8, %v120_v39, %v122_v43 }
  0x9a   :  { %278 = vrot.lane.b32.xlu0 %v202_v45, %s2239_s16  ;;  %266 = vrot.lane.b32.xlu1 %v196_v46, %s2239_s16  ;;  %v195_v17 = vsel %vm178_vm4, %v125_v12, %v138_v5 }
  0x9c   :  { %v86_v48 = vpop.permute.xlu0 %85  ;;  %v2375_v49 = vpop.permute.xlu1 %87 }
  0x9d   :  { %v91_v56 = vsel %vm89_vm10, %v84_v44, %v86_v48  ;;  %v92_v22 = vsel %vm89_vm10, %v86_v48, %v2375_v49 }
  0x9e   :  { %270 = vrot.lane.b32.xlu0 %v198_v50, %s2239_s16 }
  0xa0   :  { %v104_v52 = vpop.permute.xlu0 %103  ;;  %v106_v53 = vpop.permute.xlu1 %105 }
  0xa1   :  { %v111_v55 = vsel %vm109_vm9, %v104_v52, %v106_v53 }
  0xa2   :  { %262 = vrot.lane.b32.xlu0 %v194_v54, %s2239_s16  ;;  %v190_v59 = vsel %vm188_vm2, %v91_v56, %v111_v55 }
  0xa4   :  { %v108_v57 = vpop.permute.xlu0 %107  ;;  %v82_v61 = vpop.permute.xlu1 %81 }
  0xa5   :  { %v192_v58 = vsel %vm188_vm2, %v2375_v49, %v108_v57  ;;  %v90_v0 = vsel %vm89_vm10, %v82_v61, %v84_v44  ;;  %v112_v18 = vsel %vm109_vm9, %v106_v53, %v108_v57 }
  0xa6   :  { %258 = vrot.lane.b32.xlu1 %v192_v58, %s2239_s16  ;;  %254 = vrot.lane.b32.xlu0 %v190_v59, %s2239_s16  ;;  %v191_v23 = vsel %vm188_vm2, %v92_v22, %v112_v18 }
  0xa8   :  { %v102_v62 = vpop.permute.xlu0 %101  ;;  %v64_v8 = vpop.permute.xlu1 %63 }
  0xa9   :  { %v110_v1 = vsel %vm109_vm9, %v102_v62, %v104_v52 }
  0xaa   :  { %280 = vrot.lane.b32.xlu1 %v203_v2, %s2239_s16  ;;  %v189_v7 = vsel %vm188_vm2, %v90_v0, %v110_v1 }
  0xab   :  { %252 = vrot.lane.b32.xlu0 %v189_v7, %s2239_s16 }
  0xac   :  { %v66_v9 = vpop.permute.xlu0 %65  ;;  %v68_v21 = vpop.permute.xlu1 %67 }
  0xad   :  { %v71_v10 = vsel %vm69_vm11, %v64_v8, %v66_v9  ;;  %v72_v24 = vsel %vm69_vm11, %v66_v9, %v68_v21  ;;  %v182_v30 = vsel %vm178_vm4, %v2319_v3, %v68_v21 }
  0xae   :  { %272 = vrot.lane.b32.xlu1 %v199_v11, %s2239_s16  ;;  %v185_v13 = vsel %vm183_vm3, %v71_v10, %v91_v56  ;;  %v180_v25 = vsel %vm178_vm4, %v2321_v4, %v71_v10  ;;  %v186_v26 = vsel %vm183_vm3, %v72_v24, %v92_v22  ;;  %v181_v4 = vsel %vm178_vm4, %v2326_v6, %v72_v24 }
  0xaf   :  { %246 = vrot.lane.b32.xlu0 %v185_v13, %s2239_s16  ;;  %v2243_v6 = vmov 2   ;;  %v503_v22 = vlaneseq }
  0xb0   :  { %v62_v14 = vpop.permute.xlu0 %61 }
  0xb1   :  { %v70_v16 = vsel %vm69_vm11, %v62_v14, %v64_v8  ;;  %v205_v14 = vld [vmem:[%s3104_s1] sm:$0xff]  ;;  %v504_v24 = vshrl.u32 %v503_v22, 7  ;;  %s2208_s1 = scalar_lea.vmem %s1797_s19, 32 }
  0xb2   :  { %264 = vrot.lane.b32.xlu1 %v195_v17, %s2239_s16  ;;  %v184_v20 = vsel %vm183_vm3, %v70_v16, %v90_v0  ;;  %v179_v27 = vsel %vm178_vm4, %v2343_v15, %v70_v16  ;;  %v187_v15 = vsel %vm183_vm3, %v68_v21, %v2375_v49  ;;  %vm523_vm3 = vcmask 261120   ;;  %p2209_p0 = scmp.ne.s32.totalorder %s1797_s19, %s2208_s1  ;;  %p2214_p2 = scmp.lt.s32.totalorder %s2208_s1, %s2208_s1 }
  0xb3   :  { %244 = vrot.lane.b32.xlu0 %v184_v20, %s2239_s16 }
  0xb4   :  { %p2215_p3 = por %p2214_p2, %p2213_p1 }
  0xb6   :  { %256 = vrot.lane.b32.xlu1 %v191_v23, %s2239_s16  ;;  %v500_v23 = vld [vmem:[%s3106_s3] sm:$0x7]  ;;  %p2216_p4 = pnand %p2215_p3, %p2209_p0 }
  0xb7   :  { %238 = vrot.lane.b32.xlu0 %v180_v25, %s2239_s16  ;;  %vm501_vm15 = vcmp.gt.f32.partialorder %v500_v23, 0.5 }
  0xba   :  { %248 = vrot.lane.b32.xlu1 %v186_v26, %s2239_s16  ;;  %v2482_v26 = vsub.s32 0, %v504_v24 }
  0xbb   :  { %236 = vrot.lane.b32.xlu0 %v179_v27, %s2239_s16  ;;  %v502_v27 = vsel %vm501_vm15, 1, %v2242_v29 }
  0xbe   :  { %240 = vrot.lane.b32.xlu1 %v181_v4, %s2239_s16 }
  0xbf   :  { %242 = vrot.lane.b32.xlu0 %v182_v30, %s2239_s16  ;;  %v2485_v30 = vsub.s32 1, %v504_v24 }
  0xc2   :  { %250 = vrot.lane.b32.xlu1 %v187_v15, %s2239_s16 }
  0xc3   :  { %487 = vperm.xlu0 %2199, %v206_v31  }
  0xc6   :  { %209 = vperm.xlu1 %2198, %v206_v31  }
  0xc7   :  { %2201 = vset.pattern.permute.xlu0 %v2242_v29 }
  0xca   :  { %2200 = vset.pattern.permute.xlu1 %v2243_v6 }
  0xcb   :  { %494 = vperm.xlu1 %2200, %v206_v31  }
  0xcf   :  { %2202 = vset.pattern.permute.xlu1 %v2241_v28 }
  0xef   :  { %v285_v3 = vpop.permute.xlu1 %284 }
  0xf3   :  { %v291_v32 = vpop.permute.xlu1 %290 }
  0xf4   :  { %v289_v33 = vpop.permute.xlu0 %288 }
  0xf5   :  { %v313_v34 = vsel %vm292_vm13, %v289_v33, %v291_v32  ;;  %v506_v32 = vrot.slane %v502_v27, %v2482_v26 }
  0xf6   :  { %2105 = vmatpush3.msk.msra.mxu1 %vm178_vm4, %v313_v34 }
  0xf7   :  { %v287_v35 = vpop.permute.xlu1 %286  ;;  %2106 = vmatprep.subr.mxu1 %v2238_v19  ;;  %vm515_vm0 = vcmp.eq.s32.totalorder %v506_v32, 1 }
  0xf8   :  { %v312_v36 = vsel %vm292_vm13, %v287_v35, %v289_v33  ;;  %v311_v37 = vsel %vm292_vm13, %v285_v3, %v287_v35  ;;  %v2488_v35 = vsub.s32 2, %v504_v24 }
  0xf9   :  { %1804 = vmatprep.subr.msk.mxu0 %vm178_vm4, %v312_v36  ;;  %v510_v36 = vrot.slane %v502_v27, %v2485_v30 }
  0xfa   :  { %1805 = vmatpush1.msk.msra.mxu0 %vm178_vm4, %v311_v37  ;;  %vm601_vm4 = vcmask 195584  }
  0xfb   :  { %vm516_vm1 = vcmp.eq.s32.totalorder %v510_v36, 1 }
  0xfc   :  { %v277_v38 = vpop.permute.xlu0 %276 }
 0x100   :  { %v269_v39 = vpop.permute.xlu0 %268  ;;  %v283_v41 = vpop.permute.xlu1 %282 }
 0x104   :  { %v275_v43 = vpop.permute.xlu1 %274 }
 0x108   :  { %v261_v40 = vpop.permute.xlu0 %260 }
 0x10c   :  { %v279_v42 = vpop.permute.xlu0 %278  ;;  %v267_v45 = vpop.permute.xlu1 %266 }
 0x10d   :  { %v308_v53 = vsel %vm292_vm13, %v277_v38, %v279_v42 }
 0x110   :  { %v271_v44 = vpop.permute.xlu0 %270 }
 0x111   :  { %v305_v58 = vsel %vm292_vm13, %v269_v39, %v271_v44 }
 0x114   :  { %v263_v46 = vpop.permute.xlu0 %262 }
 0x115   :  { %v302_v63 = vsel %vm292_vm13, %v261_v40, %v263_v46 }
 0x118   :  { %v255_v47 = vpop.permute.xlu0 %254  ;;  %v259_v48 = vpop.permute.xlu1 %258 }
 0x11c   :  { %v281_v49 = vpop.permute.xlu1 %280 }
 0x11d   :  { %v253_v50 = vpop.permute.xlu0 %252  ;;  %v309_v51 = vsel %vm292_vm13, %v279_v42, %v281_v49  ;;  %v310_v52 = vsel %vm292_vm13, %v281_v49, %v283_v41 }
 0x11e   :  { %362 = vmatprep.subr.mxu0 %v309_v51  ;;  %2107 = vmatpush3.msra.mxu1 %v310_v52  ;;  %v299_v7 = vsel %vm292_vm13, %v253_v50, %v255_v47 }
 0x11f   :  { %363 = vmatpush1.msra.mxu0 %v308_v53  ;;  %2108 = vmatprep.subr.mxu1 %v2238_v19 }
 0x120   :  { %v273_v54 = vpop.permute.xlu1 %272 }
 0x121   :  { %v247_v55 = vpop.permute.xlu0 %246  ;;  %v306_v56 = vsel %vm292_vm13, %v271_v44, %v273_v54  ;;  %v307_v57 = vsel %vm292_vm13, %v273_v54, %v275_v43  ;;  %v514_v43 = vrot.slane %v502_v27, %v2488_v35  ;;  %v2500_v54 = vld [vmem:[#allocation2] sm:$0xff] }
 0x122   :  { %364 = vmatprep.subr.mxu0 %v306_v56  ;;  %2109 = vmatpush3.msra.mxu1 %v307_v57  ;;  %v552_v27 = vld [vmem:[%s3107_s4] sm:$0xff] }
 0x123   :  { %365 = vmatpush1.msra.mxu0 %v305_v58  ;;  %2110 = vmatprep.subr.mxu1 %v2238_v19  ;;  %vm517_vm2 = vcmp.eq.s32.totalorder %v514_v43, 1 }
 0x124   :  { %v265_v59 = vpop.permute.xlu1 %264 }
 0x125   :  { %v245_v60 = vpop.permute.xlu0 %244  ;;  %v303_v61 = vsel %vm292_vm13, %v263_v46, %v265_v59  ;;  %v304_v62 = vsel %vm292_vm13, %v265_v59, %v267_v45 }
 0x126   :  { %366 = vmatprep.subr.mxu0 %v303_v61  ;;  %2111 = vmatpush3.msra.mxu1 %v304_v62  ;;  %v296_v11 = vsel %vm292_vm13, %v245_v60, %v247_v55 }
 0x127   :  { %367 = vmatpush1.msra.mxu0 %v302_v63  ;;  %2112 = vmatprep.subr.mxu1 %v2238_v19 }
 0x128   :  { %v257_v0 = vpop.permute.xlu1 %256 }
 0x129   :  { %v239_v1 = vpop.permute.xlu0 %238  ;;  %v300_v2 = vsel %vm292_vm13, %v255_v47, %v257_v0  ;;  %v301_v5 = vsel %vm292_vm13, %v257_v0, %v259_v48 }
 0x12a   :  { %368 = vmatprep.subr.mxu0 %v300_v2  ;;  %2113 = vmatpush3.msra.mxu1 %v301_v5  ;;  %v553_v2 = vld [vmem:[%s3108_s5] sm:$0xff] }
 0x12b   :  { %369 = vmatpush1.msra.mxu0 %v299_v7  ;;  %2114 = vmatprep.subr.mxu1 %v2238_v19 }
 0x12c   :  { %v249_v8 = vpop.permute.xlu1 %248 }
 0x12d   :  { %v297_v9 = vsel %vm292_vm13, %v247_v55, %v249_v8  ;;  %v237_v10 = vpop.permute.xlu0 %236 }
 0x12e   :  { %370 = vmatprep.subr.mxu0 %v297_v9  ;;  %v293_v16 = vsel %vm292_vm13, %v237_v10, %v239_v1 }
 0x12f   :  { %371 = vmatpush1.msra.mxu0 %v296_v11 }
 0x130   :  { %v241_v12 = vpop.permute.xlu1 %240 }
 0x131   :  { %v294_v13 = vsel %vm292_vm13, %v239_v1, %v241_v12  ;;  %v243_v17 = vpop.permute.xlu0 %242 }
 0x132   :  { %372 = vmatprep.subr.mxu0 %v294_v13  ;;  %v295_v21 = vsel %vm292_vm13, %v241_v12, %v243_v17 }
 0x133   :  { %373 = vmatpush1.msra.mxu0 %v293_v16 }
 0x134   :  { %1806 = vmatmul.mubr.msk.f32.vlgmr.msra.gmra.mxu0 %vm332_vm14, %v205_v14  ;;  %v251_v18 = vpop.permute.xlu1 %250 }
 0x135   :  { %v298_v20 = vsel %vm292_vm13, %v249_v8, %v251_v18  ;;  %669 = vmatprep.mubr.f32.mxu0 %v2238_v19 }
 0x136   :  { %2115 = vmatpush3.msra.mxu1 %v298_v20 }
 0x137   :  { %2116 = vmatprep.subr.mxu1 %v2238_v19 }
 0x138   :  { %2117 = vmatpush3.msra.mxu1 %v295_v21 }
 0x139   :  { %2119 = vmatmul.mubr.msk.f32.vlgmr.msra.gmra.mxu1 %vm332_vm14, %v205_v14  ;;  %2121 = vmatprep.subr.mxu1 %v2238_v19 }
 0x13a   :  { %2127 = vmatprep.mubr.msk.f32.mxu1 %vm2240_vm12, %v2238_v19 }
 0x13e   :  { %v488_v31 = vpop.permute.xlu0 %487 }
 0x141   :  { %v210_v25 = vpop.permute.xlu1 %209 }
 0x146   :  { %v495_v37 = vpop.permute.xlu1 %494 }
 0x1f4   :  { %v408_v4 = vpop.f32.mrf.mxu0 }
 0x1f5   :  { %v409_v15 = vadd.f32 %v408_v4, %v210_v25 }
 0x1f6   :  { %v410_v3 = vpop.f32.mrf.mxu0 }
 0x1f7   :  { %v483_v33 = vmax.f32 %v409_v15, 0.0  ;;  %v411_v34 = vadd.f32 %v410_v3, %v210_v25  ;;  %v763_v3 = vld [vmem:[%s3109_s6] sm:$0x7] }
 0x1f8   :  { %vm764_vm5 = vcmp.gt.f32.partialorder %v763_v3, 0.5 }
 0x1f9   :  { %v490_v38 = vmul.f32 %v488_v31, %v483_v33  ;;  %v484_v39 = vmax.f32 %v411_v34, 0.0  ;;  %v479_v40 = vpop.f32.mrf.mxu1  ;;  %v765_v34 = vsel %vm764_vm5, 1, %v2242_v29 }
 0x1fa   :  { %v480_v41 = vadd.f32 %v479_v40, %v210_v25  ;;  %v773_v43 = vrot.slane %v765_v34, %v2485_v30 }
 0x1fb   :  { %v491_v42 = vmul.f32 %v488_v31, %v484_v39  ;;  %v497_v44 = vadd.f32 %v495_v37, %v490_v38  ;;  %v2120_v45 = vpop.f32.mrf.mxu1  ;;  %v769_v39 = vrot.slane %v765_v34, %v2482_v26 }
 0x1fc   :  { %v485_v46 = vmax.f32 %v480_v41, 0.0  ;;  %vm779_vm8 = vcmp.eq.s32.totalorder %v773_v43, 1  ;;  %v1825_v43 = vld [vmem:[%s3113_s10 + $0x180] sm:$0xff] }
 0x1fd   :  { %v498_v47 = vadd.f32 %v495_v37, %v491_v42  ;;  %v518_v48 = vsel %vm515_vm0, %v497_v44, 0.0  ;;  %vm778_vm7 = vcmp.eq.s32.totalorder %v769_v39, 1  ;;  %v1827_v39 = vld [vmem:[%s3113_s10 + $0x190] sm:$0xff] }
 0x1fe   :  { %v492_v49 = vmul.f32 %v488_v31, %v485_v46  ;;  %535 = vrot.lane.b32.xlu0 %v518_v48, %s2236_s14 }
 0x1ff   :  { %v519_v50 = vsel %vm516_vm1, %v498_v47, 0.0 }
 0x200   :  { %v499_v51 = vadd.f32 %v495_v37, %v492_v49  ;;  %v777_v49 = vrot.slane %v765_v34, %v2488_v35 }
 0x202   :  { %v520_v52 = vsel %vm517_vm2, %v499_v51, 0.0  ;;  %546 = vrot.lane.b32.xlu0 %v519_v50, %s2231_s28  ;;  %vm780_vm10 = vcmp.eq.s32.totalorder %v777_v49, 1  ;;  %v1847_v49 = vld [vmem:[%s3113_s10 + $0x230] sm:$0xff] }
 0x203   :  { %524 = vst.msk [vmem:[#allocation2 + $0x18] sm:$0xff] %vm523_vm3, %v520_v52 }
 0x20a   :  { %v528_v53 = vld [vmem:[#allocation2 + $0x18] sm:$0xff] }
 0x20b   :  { %548 = vrot.lane.b32.xlu1 %v528_v53, %s2231_s28  ;;  %539 = vrot.lane.b32.xlu0 %v528_v53, %s2236_s14 }
 0x20f   :  { %544 = vrot.lane.b32.xlu1 %v518_v48, %s2231_s28  ;;  %563 = vrot.lane.b32.xlu0 %v519_v50, %s2239_s16 }
 0x213   :  { %537 = vrot.lane.b32.xlu1 %v519_v50, %s2236_s14 }
 0x217   :  { %533 = vrot.lane.b32.xlu1 %v2500_v54, %s2236_s14 }
 0x21b   :  { %561 = vrot.lane.b32.xlu1 %v518_v48, %s2239_s16 }
 0x270   :  { %v536_v56 = vpop.permute.xlu0 %535 }
 0x274   :  { %v547_v58 = vpop.permute.xlu0 %546 }
 0x27d   :  { %v549_v55 = vpop.permute.xlu1 %548  ;;  %v540_v61 = vpop.permute.xlu0 %539 }
 0x27e   :  { %581 = vrot.lane.b32.xlu0 %v549_v55, %s2239_s16  ;;  %v551_v1 = vsel %vm149_vm6, %v547_v58, %v549_v55 }
 0x281   :  { %v545_v57 = vpop.permute.xlu1 %544  ;;  %v564_v7 = vpop.permute.xlu0 %563 }
 0x282   :  { %575 = vrot.lane.b32.xlu0 %v545_v57, %s2239_s16  ;;  %v550_v60 = vsel %vm149_vm6, %v545_v57, %v547_v58 }
 0x285   :  { %v538_v59 = vpop.permute.xlu1 %537 }
 0x286   :  { %577 = vrot.lane.b32.xlu0 %v550_v60, %s2239_s16  ;;  %v543_v63 = vsel %vm109_vm9, %v538_v59, %v540_v61  ;;  %v542_v5 = vsel %vm109_vm9, %v536_v56, %v538_v59 }
 0x289   :  { %v534_v62 = vpop.permute.xlu1 %533 }
 0x28a   :  { %571 = vrot.lane.b32.xlu0 %v543_v63, %s2239_s16  ;;  %v541_v0 = vsel %vm109_vm9, %v534_v62, %v536_v56 }
 0x28b   :  { %567 = vrot.lane.b32.xlu1 %v541_v0, %s2239_s16 }
 0x28d   :  { %v562_v11 = vpop.permute.xlu1 %561 }
 0x28e   :  { %573 = vrot.lane.b32.xlu0 %v540_v61, %s2239_s16  ;;  %v584_v24 = vsel %vm292_vm13, %v562_v11, %v564_v7 }
 0x28f   :  { %579 = vrot.lane.b32.xlu1 %v551_v1, %s2239_s16 }
 0x292   :  { %556 = vperm.xlu0 %2201, %v553_v2  }
 0x293   :  { %569 = vrot.lane.b32.xlu1 %v542_v5, %s2239_s16 }
 0x296   :  { %2205 = vset.pattern.permute.xlu0 %v2241_v28 }
 0x297   :  { %559 = vrot.lane.b32.xlu1 %v2500_v54, %s2239_s16 }
 0x29b   :  { %565 = vrot.lane.b32.xlu1 %v528_v53, %s2239_s16 }
 0x29f   :  { %750 = vperm.xlu1 %2202, %v553_v2  }
 0x2a3   :  { %2203 = vset.pattern.permute.xlu1 %v2243_v6 }
 0x2a4   :  { %757 = vperm.xlu1 %2203, %v553_v2  }
 0x2a8   :  { %2204 = vset.pattern.permute.xlu1 %v2242_v29 }
 0x2f0   :  { %v582_v8 = vpop.permute.xlu0 %581 }
 0x2f4   :  { %v576_v9 = vpop.permute.xlu0 %575 }
 0x2f8   :  { %v578_v10 = vpop.permute.xlu0 %577 }
 0x2f9   :  { %v589_v18 = vsel %vm292_vm13, %v576_v9, %v578_v10 }
 0x2fc   :  { %v572_v12 = vpop.permute.xlu0 %571 }
 0x2fd   :  { %v568_v13 = vpop.permute.xlu1 %567 }
 0x300   :  { %v574_v14 = vpop.permute.xlu0 %573 }
 0x301   :  { %v580_v28 = vpop.permute.xlu1 %579  ;;  %v588_v20 = vsel %vm292_vm13, %v572_v12, %v574_v14 }
 0x302   :  { %v591_v16 = vsel %vm292_vm13, %v580_v28, %v582_v8  ;;  %v590_v17 = vsel %vm292_vm13, %v578_v10, %v580_v28 }
 0x303   :  { %631 = vmatprep.subr.mxu0 %v590_v17  ;;  %2122 = vmatpush3.msra.mxu1 %v591_v16 }
 0x304   :  { %632 = vmatpush1.msra.mxu0 %v589_v18  ;;  %2123 = vmatprep.subr.mxu1 %v2238_v19 }
 0x305   :  { %2124 = vmatpush3.msra.mxu1 %v588_v20  ;;  %v570_v21 = vpop.permute.xlu1 %569 }
 0x306   :  { %v586_v22 = vsel %vm292_vm13, %v568_v13, %v570_v21  ;;  %v587_v23 = vsel %vm292_vm13, %v570_v21, %v572_v12  ;;  %2125 = vmatprep.subr.mxu1 %v2238_v19  ;;  %v815_v12 = vld [vmem:[%s3111_s8] sm:$0xff] }
 0x307   :  { %633 = vmatprep.subr.mxu0 %v587_v23 }
 0x308   :  { %634 = vmatpush1.msra.mxu0 %v586_v22 }
 0x309   :  { %635 = vmatprep.subr.mxu0 %v584_v24  ;;  %v560_v25 = vpop.permute.xlu1 %559 }
 0x30a   :  { %v583_v4 = vsel %vm292_vm13, %v560_v25, %v562_v11 }
 0x30b   :  { %636 = vmatpush1.msra.mxu0 %v583_v4 }
 0x30c   :  { %1809 = vmatmul.mubr.msk.f32.vlgmr.msra.gmra.mxu0 %vm601_vm4, %v552_v27 }
 0x30d   :  { %v566_v15 = vpop.permute.xlu1 %565  ;;  %930 = vmatprep.mubr.f32.mxu0 %v2238_v19  ;;  %v557_v32 = vpop.permute.xlu0 %556 }
 0x30e   :  { %v585_v31 = vsel %vm292_vm13, %v564_v7, %v566_v15 }
 0x30f   :  { %2126 = vmatpush3.msra.mxu1 %v585_v31 }
 0x310   :  { %2128 = vmatmul.mubr.msk.f32.vlgmr.msra.gmra.mxu1 %vm601_vm4, %v552_v27  ;;  %2130 = vmatprep.subr.mxu1 %v2238_v19 }
 0x311   :  { %2136 = vmatprep.mubr.msk.f32.mxu1 %vm2240_vm12, %v2238_v19 }
 0x31a   :  { %v751_v33 = vpop.permute.xlu1 %750 }
 0x31f   :  { %v758_v44 = vpop.permute.xlu1 %757 }
 0x3cc   :  { %v671_v36 = vpop.f32.mrf.mxu0 }
 0x3cd   :  { %v672_v37 = vadd.f32 %v671_v36, %v557_v32  ;;  %v1844_v36 = vld [vmem:[%s3113_s10 + $0x218] sm:$0xff] }
 0x3ce   :  { %v673_v38 = vpop.f32.mrf.mxu0 }
 0x3cf   :  { %v746_v40 = vmax.f32 %v672_v37, 0.0  ;;  %v674_v41 = vadd.f32 %v673_v38, %v557_v32  ;;  %v1828_v37 = vld [vmem:[%s3113_s10 + $0x198] sm:$0xff]  ;;  %v1843_v38 = vld [vmem:[%s3113_s10 + $0x210] sm:$0xff] }
 0x3d0   :  { %v742_v42 = vpop.f32.mrf.mxu1 }
 0x3d1   :  { %v747_v45 = vmax.f32 %v674_v41, 0.0  ;;  %v753_v46 = vmul.f32 %v751_v33, %v746_v40  ;;  %v743_v47 = vadd.f32 %v742_v42, %v557_v32  ;;  %v1842_v40 = vld [vmem:[%s3113_s10 + $0x208] sm:$0xff]  ;;  %v1841_v42 = vld [vmem:[%s3113_s10 + $0x200] sm:$0xff] }
 0x3d2   :  { %v2129_v48 = vpop.f32.mrf.mxu1  ;;  %v1826_v41 = vld [vmem:[%s3113_s10 + $0x188] sm:$0xff] }
 0x3d3   :  { %v754_v50 = vmul.f32 %v751_v33, %v747_v45  ;;  %v748_v51 = vmax.f32 %v743_v47, 0.0  ;;  %v760_v52 = vadd.f32 %v758_v44, %v753_v46  ;;  %v1824_v45 = vld [vmem:[%s3113_s10 + $0x178] sm:$0xff]  ;;  %v1839_v47 = vld [vmem:[%s3113_s10 + $0x1f0] sm:$0xff] }
 0x3d4   :  { %v1848_v46 = vld [vmem:[%s3113_s10 + $0x238] sm:$0xff]  ;;  %v1823_v48 = vld [vmem:[%s3113_s10 + $0x170] sm:$0xff] }
 0x3d5   :  { %v755_v53 = vmul.f32 %v751_v33, %v748_v51  ;;  %v761_v55 = vadd.f32 %v758_v44, %v754_v50  ;;  %v781_v56 = vsel %vm778_vm7, %v760_v52, 0.0  ;;  %v1838_v50 = vld [vmem:[%s3113_s10 + $0x1e8] sm:$0xff] }
 0x3d6   :  { %784 = vst [vmem:[#allocation2 + $0x8] sm:$0xff] %v781_v56  ;;  %v1822_v51 = vld [vmem:[%s3113_s10 + $0x168] sm:$0xff] }
 0x3d7   :  { %v762_v57 = vadd.f32 %v758_v44, %v755_v53  ;;  %v782_v58 = vsel %vm779_vm8, %v761_v55, 0.0  ;;  %v1840_v44 = vld [vmem:[%s3113_s10 + $0x1f8] sm:$0xff]  ;;  %v1846_v52 = vld [vmem:[%s3113_s10 + $0x228] sm:$0xff]  ;;  %v1837_v53 = vld [vmem:[%s3113_s10 + $0x1e0] sm:$0xff] }
 0x3d8   :  { %785 = vst [vmem:[#allocation2 + $0x10] sm:$0xff] %v782_v58  ;;  %808 = vrot.lane.b32.xlu0 %v782_v58, %s2231_s28  ;;  %v1821_v55 = vld [vmem:[%s3113_s10 + $0x160] sm:$0xff] }
 0x3d9   :  { %v783_v59 = vsel %vm780_vm10, %v762_v57, 0.0  ;;  %v1836_v57 = vld [vmem:[%s3113_s10 + $0x1d8] sm:$0xff] }
 0x3da   :  { %786 = vst.msk [vmem:[#allocation2 + $0x18] sm:$0xff] %vm523_vm3, %v783_v59  ;;  %v1820_v59 = vld [vmem:[%s3113_s10 + $0x158] sm:$0xff] }
 0x3dc   :  { %799 = vrot.lane.b32.xlu0 %v782_v58, %s2236_s14 }
 0x3e0   :  { %806 = vrot.lane.b32.xlu0 %v781_v56, %s2231_s28 }
 0x3e1   :  { %v790_v60 = vld [vmem:[#allocation2 + $0x18] sm:$0xff] }
 0x3e2   :  { %810 = vrot.lane.b32.xlu1 %v790_v60, %s2231_s28 }
 0x3e4   :  { %795 = vrot.lane.b32.xlu0 %v2500_v54, %s2236_s14 }
 0x3e6   :  { %801 = vrot.lane.b32.xlu1 %v790_v60, %s2236_s14 }
 0x3ea   :  { %797 = vrot.lane.b32.xlu1 %v781_v56, %s2236_s14 }
 0x44a   :  { %v809_v61 = vpop.permute.xlu0 %808 }
 0x44e   :  { %v800_v0 = vpop.permute.xlu0 %799 }
 0x452   :  { %v807_v5 = vpop.permute.xlu0 %806 }
 0x453   :  { %v812_v9 = vsel %vm149_vm6, %v807_v5, %v809_v61 }
 0x454   :  { %v811_v62 = vpop.permute.xlu1 %810 }
 0x455   :  { %843 = vrot.lane.b32.xlu0 %v811_v62, %s2239_s16  ;;  %v813_v63 = vsel %vm149_vm6, %v809_v61, %v811_v62  ;;  %v1819_v61 = vld [vmem:[%s3113_s10 + $0x150] sm:$0xff]  ;;  %v1834_v62 = vld [vmem:[%s3113_s10 + $0x1c8] sm:$0xff] }
 0x456   :  { %841 = vrot.lane.b32.xlu1 %v813_v63, %s2239_s16  ;;  %v796_v8 = vpop.permute.xlu0 %795  ;;  %v1818_v63 = vld [vmem:[%s3113_s10 + $0x148] sm:$0xff] }
 0x458   :  { %v802_v1 = vpop.permute.xlu1 %801 }
 0x459   :  { %835 = vrot.lane.b32.xlu0 %v802_v1, %s2239_s16  ;;  %v805_v2 = vsel %vm109_vm9, %v800_v0, %v802_v1  ;;  %v1817_v1 = vld [vmem:[%s3113_s10 + $0x140] sm:$0xff] }
 0x45a   :  { %833 = vrot.lane.b32.xlu1 %v805_v2, %s2239_s16  ;;  %v1832_v2 = vld [vmem:[%s3113_s10 + $0x1b8] sm:$0xff] }
 0x45c   :  { %v798_v7 = vpop.permute.xlu1 %797 }
 0x45d   :  { %827 = vrot.lane.b32.xlu0 %v790_v60, %s2239_s16  ;;  %v803_v10 = vsel %vm109_vm9, %v796_v8, %v798_v7  ;;  %v804_v11 = vsel %vm109_vm9, %v798_v7, %v800_v0  ;;  %v1835_v60 = vld [vmem:[%s3113_s10 + $0x1d0] sm:$0xff]  ;;  %v1833_v0 = vld [vmem:[%s3113_s10 + $0x1c0] sm:$0xff] }
 0x45e   :  { %825 = vrot.lane.b32.xlu1 %v782_v58, %s2239_s16  ;;  %v1076_v58 = vld [vmem:[%s3113_s10 + $0xf8] sm:$0xff]  ;;  %v1831_v7 = vld [vmem:[%s3113_s10 + $0x1b0] sm:$0xff] }
 0x45f   :  { %v1815_v8 = vld [vmem:[%s3113_s10 + $0x130] sm:$0xff] }
 0x461   :  { %837 = vrot.lane.b32.xlu0 %v807_v5, %s2239_s16  ;;  %v1816_v5 = vld [vmem:[%s3113_s10 + $0x138] sm:$0xff] }
 0x462   :  { %839 = vrot.lane.b32.xlu1 %v812_v9, %s2239_s16  ;;  %v1830_v9 = vld [vmem:[%s3113_s10 + $0x1a8] sm:$0xff] }
 0x465   :  { %829 = vrot.lane.b32.xlu0 %v803_v10, %s2239_s16  ;;  %v1814_v10 = vld [vmem:[%s3113_s10 + $0x128] sm:$0xff] }
 0x466   :  { %831 = vrot.lane.b32.xlu1 %v804_v11, %s2239_s16  ;;  %v1829_v11 = vld [vmem:[%s3113_s10 + $0x1a0] sm:$0xff] }
 0x469   :  { %821 = vrot.lane.b32.xlu0 %v2500_v54, %s2239_s16 }
 0x46a   :  { %823 = vrot.lane.b32.xlu1 %v781_v56, %s2239_s16  ;;  %v1845_v56 = vld [vmem:[%s3113_s10 + $0x220] sm:$0xff] }
 0x46d   :  { %1011 = vperm.xlu0 %2205, %v815_v12  }
 0x46e   :  { %818 = vperm.xlu1 %2204, %v815_v12  }
 0x471   :  { %2207 = vset.pattern.permute.xlu0 %v2243_v6 }
 0x472   :  { %2206 = vset.pattern.permute.xlu1 %v2243_v6  ;;  %v814_v6 = vld [vmem:[%s3110_s7] sm:$0xff] }
 0x473   :  { %1018 = vperm.xlu1 %2206, %v815_v12   ;;  %v1813_v12 = vld [vmem:[%s3113_s10 + $0x120] sm:$0xff] }
 0x4c7   :  { %v844_v13 = vpop.permute.xlu0 %843 }
 0x4c8   :  { %v842_v14 = vpop.permute.xlu1 %841 }
 0x4c9   :  { %v853_v28 = vsel %vm292_vm13, %v842_v14, %v844_v13  ;;  %v1024_v13 = vld [vmem:[%s3112_s9] sm:$0x7] }
 0x4ca   :  { %2131 = vmatpush3.msra.mxu1 %v853_v28  ;;  %vm1025_vm6 = vcmp.gt.f32.partialorder %v1024_v13, 0.5 }
 0x4cb   :  { %v836_v16 = vpop.permute.xlu0 %835  ;;  %2132 = vmatprep.subr.mxu1 %v2238_v19  ;;  %v1026_v28 = vsel %vm1025_vm6, 1, %v2242_v29  ;;  %v1075_v29 = vld [vmem:[%s3113_s10 + $0xf0] sm:$0xff] }
 0x4cc   :  { %v834_v54 = vpop.permute.xlu1 %833 }
 0x4cd   :  { %v850_v17 = vsel %vm292_vm13, %v834_v54, %v836_v16 }
 0x4ce   :  { %2133 = vmatpush3.msra.mxu1 %v850_v17 }
 0x4cf   :  { %v828_v18 = vpop.permute.xlu0 %827  ;;  %2134 = vmatprep.subr.mxu1 %v2238_v19 }
 0x4d0   :  { %v826_v20 = vpop.permute.xlu1 %825 }
 0x4d1   :  { %v847_v21 = vsel %vm292_vm13, %v826_v20, %v828_v18 }
 0x4d2   :  { %2135 = vmatpush3.msra.mxu1 %v847_v21 }
 0x4d3   :  { %2137 = vmatmul.mubr.msk.f32.vlgmr.msra.gmra.mxu1 %vm601_vm4, %v814_v6  ;;  %v838_v22 = vpop.permute.xlu0 %837  ;;  %2139 = vmatprep.subr.mxu1 %v2238_v19 }
 0x4d4   :  { %v840_v23 = vpop.permute.xlu1 %839  ;;  %2147 = vmatprep.mubr.msk.f32.mxu1 %vm2240_vm12, %v2238_v19  ;;  %2140 = vmatpush3.msra.mxu1 %v1848_v46 }
 0x4d5   :  { %v851_v24 = vsel %vm292_vm13, %v838_v22, %v840_v23  ;;  %v852_v25 = vsel %vm292_vm13, %v840_v23, %v842_v14  ;;  %2141 = vmatprep.subr.mxu1 %v2238_v19 }
 0x4d6   :  { %892 = vmatprep.subr.mxu0 %v852_v25  ;;  %2142 = vmatpush3.msra.mxu1 %v1847_v49  ;;  %v1054_v49 = vld [vmem:[%s3113_s10 + $0x48] sm:$0xff] }
 0x4d7   :  { %893 = vmatpush1.msra.mxu0 %v851_v24  ;;  %v830_v27 = vpop.permute.xlu0 %829  ;;  %2143 = vmatprep.subr.mxu1 %v2238_v19 }
 0x4d8   :  { %v832_v4 = vpop.permute.xlu1 %831  ;;  %2144 = vmatpush3.msra.mxu1 %v1846_v52 }
 0x4d9   :  { %v848_v15 = vsel %vm292_vm13, %v830_v27, %v832_v4  ;;  %v849_v31 = vsel %vm292_vm13, %v832_v4, %v834_v54  ;;  %2145 = vmatprep.subr.mxu1 %v2238_v19  ;;  %v1060_v27 = vld [vmem:[%s3113_s10 + $0x78] sm:$0xff] }
 0x4da   :  { %894 = vmatprep.subr.mxu0 %v849_v31  ;;  %2146 = vmatpush3.msra.mxu1 %v1845_v56  ;;  %v1068_v56 = vld [vmem:[%s3113_s10 + $0xb8] sm:$0xff] }
 0x4db   :  { %895 = vmatpush1.msra.mxu0 %v848_v15  ;;  %v822_v3 = vpop.permute.xlu0 %821  ;;  %1984 = vmatprep.subr.mxu1 %v1076_v58  ;;  %v1074_v15 = vld [vmem:[%s3113_s10 + $0xe8] sm:$0xff]  ;;  %v1052_v58 = vld [vmem:[%s3113_s10 + $0x38] sm:$0xff] }
 0x4dc   :  { %v824_v32 = vpop.permute.xlu1 %823 }
 0x4dd   :  { %v845_v33 = vsel %vm292_vm13, %v822_v3, %v824_v32  ;;  %v846_v34 = vsel %vm292_vm13, %v824_v32, %v826_v20  ;;  %v1038_v20 = vrot.slane %v1026_v28, %v2488_v35  ;;  %v1059_v35 = vld [vmem:[%s3113_s10 + $0x70] sm:$0xff]  ;;  %v1058_v3 = vld [vmem:[%s3113_s10 + $0x68] sm:$0xff] }
 0x4de   :  { %896 = vmatprep.subr.mxu0 %v846_v34 }
 0x4df   :  { %897 = vmatpush1.msra.mxu0 %v845_v33  ;;  %vm1041_vm9 = vcmp.eq.s32.totalorder %v1038_v20, 1  ;;  %v1073_v33 = vld [vmem:[%s3113_s10 + $0xe0] sm:$0xff]  ;;  %v1866_v20 = vld [vmem:[%s3113_s10 + $0x2a8] sm:$0xff] }
 0x4e0   :  { %1811 = vmatmul.mubr.msk.f32.vlgmr.msra.gmra.mxu0 %vm601_vm4, %v814_v6  ;;  %1944 = vmatprep.subr.mxu0 %v1844_v36  ;;  %v1030_v36 = vrot.slane %v1026_v28, %v2482_v26  ;;  %v1056_v26 = vld [vmem:[%s3113_s10 + $0x58] sm:$0xff] }
 0x4e1   :  { %1945 = vmatpush3.msra.mxu0 %v1828_v37 }
 0x4e2   :  { %1946 = vmatprep.subr.mxu0 %v1843_v38  ;;  %v1057_v38 = vld [vmem:[%s3113_s10 + $0x60] sm:$0xff]  ;;  %vm2763_vm11 = vcmp.eq.s32.totalorder %v1030_v36, 1 }
 0x4e3   :  { %1947 = vmatpush3.msra.mxu0 %v1827_v39  ;;  %v1072_v39 = vld [vmem:[%s3113_s10 + $0xd8] sm:$0xff]  ;;  %v1885_v36 = vld [vmem:[%s3113_s10 + $0x340] sm:$0xff] }
 0x4e4   :  { %1948 = vmatprep.subr.mxu0 %v1842_v40  ;;  %v1034_v40 = vrot.slane %v1026_v28, %v2485_v30  ;;  %v1055_v30 = vld [vmem:[%s3113_s10 + $0x50] sm:$0xff] }
 0x4e5   :  { %1949 = vmatpush3.msra.mxu0 %v1826_v41  ;;  %v1047_v28 = vld [vmem:[%s3113_s10 + $0x10] sm:$0xff] }
 0x4e6   :  { %1950 = vmatprep.subr.mxu0 %v1841_v42  ;;  %vm1040_vm13 = vcmp.eq.s32.totalorder %v1034_v40, 1  ;;  %v1860_v40 = vld [vmem:[%s3113_s10 + $0x278] sm:$0xff] }
 0x4e7   :  { %1951 = vmatpush3.msra.mxu0 %v1825_v43  ;;  %v1071_v43 = vld [vmem:[%s3113_s10 + $0xd0] sm:$0xff] }
 0x4e8   :  { %1952 = vmatprep.subr.mxu0 %v1840_v44  ;;  %v1012_v18 = vpop.permute.xlu0 %1011 }
 0x4e9   :  { %1953 = vmatpush3.msra.mxu0 %v1824_v45  ;;  %v819_v14 = vpop.permute.xlu1 %818  ;;  %v1904_v45 = vld [vmem:[%s3113_s10 + $0x3d0] sm:$0xff] }
 0x4ea   :  { %1954 = vmatprep.subr.mxu0 %v1839_v47  ;;  %v1070_v47 = vld [vmem:[%s3113_s10 + $0xc8] sm:$0xff] }
 0x4eb   :  { %1955 = vmatpush3.msra.mxu0 %v1823_v48 }
 0x4ec   :  { %1956 = vmatprep.subr.mxu0 %v1838_v50 }
 0x4ed   :  { %1957 = vmatpush3.msra.mxu0 %v1822_v51  ;;  %v1069_v51 = vld [vmem:[%s3113_s10 + $0xc0] sm:$0xff] }
 0x4ee   :  { %1958 = vmatprep.subr.mxu0 %v1837_v53  ;;  %v1019_v21 = vpop.permute.xlu1 %1018  ;;  %v1053_v53 = vld [vmem:[%s3113_s10 + $0x40] sm:$0xff] }
 0x4ef   :  { %1959 = vmatpush3.msra.mxu0 %v1821_v55 }
 0x4f0   :  { %1960 = vmatprep.subr.mxu0 %v1836_v57 }
 0x4f1   :  { %1961 = vmatpush3.msra.mxu0 %v1820_v59  ;;  %v1080_v59 = vld [vmem:[%s3113_s10 + $0x118] sm:$0xff] }
 0x4f2   :  { %1962 = vmatprep.subr.mxu0 %v1835_v60  ;;  %v1067_v60 = vld [vmem:[%s3113_s10 + $0xb0] sm:$0xff] }
 0x4f3   :  { %1963 = vmatpush3.msra.mxu0 %v1819_v61  ;;  %v1051_v61 = vld [vmem:[%s3113_s10 + $0x30] sm:$0xff] }
 0x4f4   :  { %1964 = vmatprep.subr.mxu0 %v1834_v62  ;;  %v1079_v62 = vld [vmem:[%s3113_s10 + $0x110] sm:$0xff] }
 0x4f5   :  { %1965 = vmatpush3.msra.mxu0 %v1818_v63  ;;  %v1066_v63 = vld [vmem:[%s3113_s10 + $0xa8] sm:$0xff] }
 0x4f6   :  { %1966 = vmatprep.subr.mxu0 %v1833_v0  ;;  %v1050_v0 = vld [vmem:[%s3113_s10 + $0x28] sm:$0xff] }
 0x4f7   :  { %1967 = vmatpush3.msra.mxu0 %v1817_v1  ;;  %v1078_v1 = vld [vmem:[%s3113_s10 + $0x108] sm:$0xff] }
 0x4f8   :  { %1968 = vmatprep.subr.mxu0 %v1832_v2  ;;  %v1065_v2 = vld [vmem:[%s3113_s10 + $0xa0] sm:$0xff] }
 0x4f9   :  { %1969 = vmatpush3.msra.mxu0 %v1816_v5  ;;  %v1049_v5 = vld [vmem:[%s3113_s10 + $0x20] sm:$0xff] }
 0x4fa   :  { %1970 = vmatprep.subr.mxu0 %v1831_v7  ;;  %v1077_v7 = vld [vmem:[%s3113_s10 + $0x100] sm:$0xff] }
 0x4fb   :  { %1971 = vmatpush3.msra.mxu0 %v1815_v8  ;;  %v1064_v8 = vld [vmem:[%s3113_s10 + $0x98] sm:$0xff] }
 0x4fc   :  { %1972 = vmatprep.subr.mxu0 %v1830_v9  ;;  %v1884_v9 = vld [vmem:[%s3113_s10 + $0x338] sm:$0xff] }
 0x4fd   :  { %1973 = vmatpush3.msra.mxu0 %v1814_v10  ;;  %v1048_v10 = vld [vmem:[%s3113_s10 + $0x18] sm:$0xff] }
 0x4fe   :  { %1974 = vmatprep.subr.mxu0 %v1829_v11  ;;  %v1868_v11 = vld [vmem:[%s3113_s10 + $0x2b8] sm:$0xff] }
 0x4ff   :  { %1975 = vmatpush3.msra.mxu0 %v1813_v12  ;;  %v1063_v12 = vld [vmem:[%s3113_s10 + $0x90] sm:$0xff] }
 0x500   :  { %2150 = vmatprep.subr.mxu0 %v2238_v19 }
 0x593   :  { %v1003_v16 = vpop.f32.mrf.mxu1 }
 0x594   :  { %v1004_v54 = vadd.f32 %v1003_v16, %v819_v14  ;;  %v1867_v16 = vld [vmem:[%s3113_s10 + $0x2b0] sm:$0xff] }
 0x595   :  { %v2138_v17 = vpop.f32.mrf.mxu1 }
 0x596   :  { %v1009_v6 = vmax.f32 %v1004_v54, 0.0  ;;  %v1062_v54 = vld [vmem:[%s3113_s10 + $0x88] sm:$0xff] }
 0x597   :  { %v1882_v17 = vld [vmem:[%s3113_s10 + $0x328] sm:$0xff] }
 0x598   :  { %v1016_v22 = vmul.f32 %v1012_v18, %v1009_v6  ;;  %v1061_v6 = vld [vmem:[%s3113_s10 + $0x80] sm:$0xff] }
 0x59a   :  { %v1023_v23 = vadd.f32 %v1019_v21, %v1016_v22  ;;  %v1045_v22 = vld [vmem:[%s3113_s10] sm:$0xff] }
 0x59c   :  { %v2725_v24 = vsel %vm1041_vm9, %v1023_v23, 0.0  ;;  %v1865_v23 = vld [vmem:[%s3113_s10 + $0x2a0] sm:$0xff] }
 0x59d   :  { %v1123_v25 = vrot.slane %v2725_v24, 2 }
 0x59f   :  { %2148 = vmatmul.mubr.msk.f32.vlgmr.msra.gmra.mxu1 %vm523_vm3, %v1123_v25  ;;  %v1880_v25 = vld [vmem:[%s3113_s10 + $0x318] sm:$0xff] }
 0x5a0   :  { %1985 = vmatpush3.msra.mxu1 %v1060_v27  ;;  %v932_v4 = vpop.f32.mrf.mxu0  ;;  %v1864_v27 = vld [vmem:[%s3113_s10 + $0x298] sm:$0xff] }
 0x5a1   :  { %v933_v31 = vadd.f32 %v932_v4, %v819_v14  ;;  %1986 = vmatprep.subr.mxu1 %v1075_v29  ;;  %v1888_v29 = vld [vmem:[%s3113_s10 + $0x358] sm:$0xff]  ;;  %v1863_v4 = vld [vmem:[%s3113_s10 + $0x290] sm:$0xff] }
 0x5a2   :  { %1987 = vmatpush3.msra.mxu1 %v1059_v35  ;;  %v934_v32 = vpop.f32.mrf.mxu0  ;;  %v1879_v35 = vld [vmem:[%s3113_s10 + $0x310] sm:$0xff] }
 0x5a3   :  { %v1007_v34 = vmax.f32 %v933_v31, 0.0  ;;  %v935_v37 = vadd.f32 %v934_v32, %v819_v14  ;;  %1988 = vmatprep.subr.mxu1 %v1074_v15  ;;  %v1883_v14 = vld [vmem:[%s3113_s10 + $0x330] sm:$0xff]  ;;  %v1878_v31 = vld [vmem:[%s3113_s10 + $0x308] sm:$0xff] }
 0x5a4   :  { %1989 = vmatpush3.msra.mxu1 %v1058_v3  ;;  %v1887_v15 = vld [vmem:[%s3113_s10 + $0x350] sm:$0xff]  ;;  %v1862_v3 = vld [vmem:[%s3113_s10 + $0x288] sm:$0xff] }
 0x5a5   :  { %v1014_v41 = vmul.f32 %v1012_v18, %v1007_v34  ;;  %v1008_v42 = vmax.f32 %v935_v37, 0.0  ;;  %1990 = vmatprep.subr.mxu1 %v1073_v33  ;;  %v1886_v32 = vld [vmem:[%s3113_s10 + $0x348] sm:$0xff]  ;;  %v1877_v33 = vld [vmem:[%s3113_s10 + $0x300] sm:$0xff]  ;;  %v1876_v37 = vld [vmem:[%s3113_s10 + $0x2f8] sm:$0xff] }
 0x5a6   :  { %1991 = vmatpush3.msra.mxu1 %v1057_v38  ;;  %v1861_v34 = vld [vmem:[%s3113_s10 + $0x280] sm:$0xff]  ;;  %v1921_v38 = vld [vmem:[%s3113_s10 + $0x458] sm:$0xff] }
 0x5a7   :  { %v2761_v44 = vadd.f32 %v1019_v21, %v1014_v41  ;;  %v1015_v46 = vmul.f32 %v1012_v18, %v1008_v42  ;;  %1992 = vmatprep.subr.mxu1 %v1072_v39  ;;  %v1046_v18 = vld [vmem:[%s3113_s10 + $0x8] sm:$0xff]  ;;  %v1449_v39 = vrot.slane %v2725_v24, 4  ;;  %v1905_v41 = vld [vmem:[%s3113_s10 + $0x3d8] sm:$0xff]  ;;  %v1875_v42 = vld [vmem:[%s3113_s10 + $0x2f0] sm:$0xff] }
 0x5a8   :  { %1993 = vmatpush3.msra.mxu1 %v1056_v26 }
 0x5a9   :  { %v1022_v48 = vadd.f32 %v1019_v21, %v1015_v46  ;;  %1994 = vmatprep.subr.mxu1 %v1071_v43  ;;  %v2779_v50 = vsel %vm2763_vm11, %v2761_v44, 0.0  ;;  %v1881_v21 = vld [vmem:[%s3113_s10 + $0x320] sm:$0xff]  ;;  %v1920_v43 = vld [vmem:[%s3113_s10 + $0x450] sm:$0xff]  ;;  %v1874_v46 = vld [vmem:[%s3113_s10 + $0x2e8] sm:$0xff] }
 0x5aa   :  { %1995 = vmatpush3.msra.mxu1 %v1055_v30  ;;  %v1121_v57 = vrot.slane %v2779_v50, 2  ;;  %v1919_v30 = vld [vmem:[%s3113_s10 + $0x448] sm:$0xff] }
 0x5ab   :  { %1996 = vmatprep.subr.mxu1 %v1070_v47  ;;  %v2784_v52 = vsel %vm1040_vm13, %v1022_v48, 0.0  ;;  %1850 = vmatprep.mubr.msk.f32.mxu1 %vm1040_vm13, %v1022_v48  ;;  %v1858_v47 = vld [vmem:[%s3113_s10 + $0x268] sm:$0xff] }
 0x5ac   :  { %1997 = vmatpush3.msra.mxu1 %v1054_v49  ;;  %v1122_v55 = vrot.slane %v2784_v52, 2  ;;  %v1448_v13 = vrot.slane %v2784_v52, 4  ;;  %v1633_v26 = vrot.slane %v2784_v52, 6  ;;  %v1903_v48 = vld [vmem:[%s3113_s10 + $0x3c8] sm:$0xff]  ;;  %v1873_v49 = vld [vmem:[%s3113_s10 + $0x2e0] sm:$0xff] }
 0x5ad   :  { %1998 = vmatprep.subr.mxu1 %v1069_v51  ;;  %v1918_v51 = vld [vmem:[%s3113_s10 + $0x440] sm:$0xff] }
 0x5ae   :  { %1999 = vmatpush3.msra.mxu1 %v1053_v53  ;;  %1192 = vmatprep.mubr.f32.mxu0 %v1122_v55  ;;  %v1857_v52 = vld [vmem:[%s3113_s10 + $0x260] sm:$0xff]  ;;  %v1872_v55 = vld [vmem:[%s3113_s10 + $0x2d8] sm:$0xff] }
 0x5af   :  { %2000 = vmatprep.subr.mxu1 %v1068_v56  ;;  %1193 = vmatmul.mubr.f32.vlgmr.msra.gmra.mxu0 %v1121_v57  ;;  %v1902_v53 = vld [vmem:[%s3113_s10 + $0x3c0] sm:$0xff]  ;;  %v1917_v56 = vld [vmem:[%s3113_s10 + $0x438] sm:$0xff] }
 0x5b0   :  { %2001 = vmatpush3.msra.mxu1 %v1052_v58  ;;  %2151 = vmatpush3.msra.mxu0 %v1080_v59  ;;  %v1856_v57 = vld [vmem:[%s3113_s10 + $0x258] sm:$0xff]  ;;  %v1871_v59 = vld [vmem:[%s3113_s10 + $0x2d0] sm:$0xff] }
 0x5b1   :  { %2002 = vmatprep.subr.mxu1 %v1067_v60  ;;  %2152 = vmatprep.subr.mxu0 %v2238_v19  ;;  %v1901_v58 = vld [vmem:[%s3113_s10 + $0x3b8] sm:$0xff]  ;;  %v1916_v60 = vld [vmem:[%s3113_s10 + $0x430] sm:$0xff] }
 0x5b2   :  { %2003 = vmatpush3.msra.mxu1 %v1051_v61  ;;  %2153 = vmatpush3.msra.mxu0 %v1079_v62  ;;  %v1855_v61 = vld [vmem:[%s3113_s10 + $0x250] sm:$0xff] }
 0x5b3   :  { %2004 = vmatprep.subr.mxu1 %v1066_v63  ;;  %2154 = vmatprep.subr.mxu0 %v2238_v19  ;;  %v1900_v62 = vld [vmem:[%s3113_s10 + $0x3b0] sm:$0xff]  ;;  %v1870_v63 = vld [vmem:[%s3113_s10 + $0x2c8] sm:$0xff] }
 0x5b4   :  { %2005 = vmatpush3.msra.mxu1 %v1050_v0  ;;  %2155 = vmatpush3.msra.mxu0 %v1078_v1  ;;  %v1915_v0 = vld [vmem:[%s3113_s10 + $0x428] sm:$0xff] }
 0x5b5   :  { %2006 = vmatprep.subr.mxu1 %v1065_v2  ;;  %2156 = vmatprep.subr.mxu0 %v2238_v19  ;;  %v1854_v1 = vld [vmem:[%s3113_s10 + $0x248] sm:$0xff] }
 0x5b6   :  { %2007 = vmatpush3.msra.mxu1 %v1049_v5  ;;  %2157 = vmatpush3.msra.mxu0 %v1077_v7  ;;  %v1899_v2 = vld [vmem:[%s3113_s10 + $0x3a8] sm:$0xff]  ;;  %v1869_v5 = vld [vmem:[%s3113_s10 + $0x2c0] sm:$0xff] }
 0x5b7   :  { %2158 = vmatprep.mubr.msk.f32.mxu0 %vm2240_vm12, %v2238_v19  ;;  %2008 = vmatprep.subr.mxu1 %v1064_v8  ;;  %v1914_v7 = vld [vmem:[%s3113_s10 + $0x420] sm:$0xff] }
 0x5b8   :  { %2159 = vmatmul.mubr.msk.f32.vlgmr.msra.gmra.mxu0 %vm523_vm3, %v2725_v24  ;;  %2024 = vmatprep.subr.mxu0 %v1884_v9  ;;  %v1853_v8 = vld [vmem:[%s3113_s10 + $0x240] sm:$0xff] }
 0x5b9   :  { %2009 = vmatpush3.msra.mxu1 %v1048_v10  ;;  %2025 = vmatpush3.msra.mxu0 %v1868_v11  ;;  %v1898_v9 = vld [vmem:[%s3113_s10 + $0x3a0] sm:$0xff]  ;;  %v1447_v10 = vrot.slane %v2779_v50, 4  ;;  %v1913_v11 = vld [vmem:[%s3113_s10 + $0x418] sm:$0xff] }
 0x5ba   :  { %1518 = vmatprep.mubr.f32.mxu0 %v1448_v13  ;;  %2010 = vmatprep.subr.mxu1 %v1063_v12  ;;  %v1897_v12 = vld [vmem:[%s3113_s10 + $0x398] sm:$0xff] }
 0x5bb   :  { %2026 = vmatprep.subr.mxu0 %v1883_v14  ;;  %2011 = vmatpush3.msra.mxu1 %v1047_v28  ;;  %v1925_v13 = vld [vmem:[%s3113_s10 + $0x478] sm:$0xff]  ;;  %v1912_v14 = vld [vmem:[%s3113_s10 + $0x410] sm:$0xff] }
 0x5bc   :  { %2027 = vmatpush3.msra.mxu0 %v1867_v16  ;;  %2012 = vmatprep.subr.mxu1 %v1062_v54  ;;  %v1896_v28 = vld [vmem:[%s3113_s10 + $0x390] sm:$0xff]  ;;  %v1911_v54 = vld [vmem:[%s3113_s10 + $0x408] sm:$0xff] }
 0x5bd   :  { %2028 = vmatprep.subr.mxu0 %v1882_v17  ;;  %2013 = vmatpush3.msra.mxu1 %v1046_v18  ;;  %v1924_v16 = vld [vmem:[%s3113_s10 + $0x470] sm:$0xff]  ;;  %v1895_v17 = vld [vmem:[%s3113_s10 + $0x388] sm:$0xff] }
 0x5be   :  { %2029 = vmatpush3.msra.mxu0 %v1866_v20  ;;  %2014 = vmatprep.subr.mxu1 %v1061_v6  ;;  %v1923_v18 = vld [vmem:[%s3113_s10 + $0x468] sm:$0xff]  ;;  %v1910_v20 = vld [vmem:[%s3113_s10 + $0x400] sm:$0xff] }
 0x5bf   :  { %2030 = vmatprep.subr.mxu0 %v1881_v21  ;;  %2015 = vmatpush3.msra.mxu1 %v1045_v22  ;;  %v1894_v6 = vld [vmem:[%s3113_s10 + $0x380] sm:$0xff]  ;;  %v1909_v22 = vld [vmem:[%s3113_s10 + $0x3f8] sm:$0xff] }
 0x5c0   :  { %2031 = vmatpush3.msra.mxu0 %v1865_v23  ;;  %1851 = vmatmul.mubr.msk.f32.vlgmr.msra.gmra.mxu1 %vm2763_vm11, %v2761_v44  ;;  %v1859_v44 = vld [vmem:[%s3113_s10 + $0x270] sm:$0xff]  ;;  %v1922_v21 = vld [vmem:[%s3113_s10 + $0x460] sm:$0xff]  ;;  %v1893_v23 = vld [vmem:[%s3113_s10 + $0x378] sm:$0xff] }
 0x5c1   :  { %2032 = vmatprep.subr.mxu0 %v1880_v25  ;;  %2161 = vmatprep.subr.mxu1 %v2238_v19  ;;  %v1634_v25 = vrot.slane %v2725_v24, 6  ;;  %v1907_v24 = vld [vmem:[%s3113_s10 + $0x3e8] sm:$0xff] }
 0x5c2   :  { %2033 = vmatpush3.msra.mxu0 %v1864_v27  ;;  %2162 = vmatpush3.msra.mxu1 %v1888_v29  ;;  %v1908_v27 = vld [vmem:[%s3113_s10 + $0x3f0] sm:$0xff] }
 0x5c3   :  { %2034 = vmatprep.subr.mxu0 %v1879_v35  ;;  %2163 = vmatprep.subr.mxu1 %v2238_v19  ;;  %v1892_v29 = vld [vmem:[%s3113_s10 + $0x370] sm:$0xff]  ;;  %v1891_v35 = vld [vmem:[%s3113_s10 + $0x368] sm:$0xff] }
 0x5c4   :  { %2035 = vmatpush3.msra.mxu0 %v1863_v4  ;;  %2164 = vmatpush3.msra.mxu1 %v1887_v15  ;;  %v1890_v4 = vld [vmem:[%s3113_s10 + $0x360] sm:$0xff]  ;;  %v1632_v15 = vrot.slane %v2779_v50, 6 }
 0x5c5   :  { %2036 = vmatprep.subr.mxu0 %v1878_v31  ;;  %2165 = vmatprep.subr.mxu1 %v2238_v19 }
 0x5c6   :  { %2037 = vmatpush3.msra.mxu0 %v1862_v3  ;;  %2166 = vmatpush3.msra.mxu1 %v1886_v32 }
 0x5c7   :  { %2038 = vmatprep.subr.mxu0 %v1877_v33  ;;  %2167 = vmatprep.subr.mxu1 %v2238_v19 }
 0x5c8   :  { %2039 = vmatpush3.msra.mxu0 %v1861_v34  ;;  %2168 = vmatpush3.msra.mxu1 %v1885_v36 }
 0x5c9   :  { %2169 = vmatprep.mubr.msk.f32.mxu1 %vm2240_vm12, %v2238_v19  ;;  %2040 = vmatprep.subr.mxu0 %v1876_v37 }
 0x5ca   :  { %2170 = vmatmul.mubr.msk.f32.vlgmr.msra.gmra.mxu1 %vm523_vm3, %v1449_v39  ;;  %2064 = vmatprep.subr.mxu1 %v1921_v38 }
 0x5cb   :  { %2041 = vmatpush3.msra.mxu0 %v1860_v40  ;;  %2065 = vmatpush3.msra.mxu1 %v1905_v41 }
 0x5cc   :  { %1703 = vmatprep.mubr.f32.mxu1 %v1633_v26  ;;  %2042 = vmatprep.subr.mxu0 %v1875_v42 }
 0x5cd   :  { %2066 = vmatprep.subr.mxu1 %v1920_v43  ;;  %2043 = vmatpush3.msra.mxu0 %v1859_v44 }
 0x5ce   :  { %2067 = vmatpush3.msra.mxu1 %v1904_v45  ;;  %2044 = vmatprep.subr.mxu0 %v1874_v46 }
 0x5cf   :  { %2068 = vmatprep.subr.mxu1 %v1919_v30  ;;  %2045 = vmatpush3.msra.mxu0 %v1858_v47 }
 0x5d0   :  { %2069 = vmatpush3.msra.mxu1 %v1903_v48  ;;  %2046 = vmatprep.subr.mxu0 %v1873_v49 }
 0x5d1   :  { %2070 = vmatprep.subr.mxu1 %v1918_v51  ;;  %2047 = vmatpush3.msra.mxu0 %v1857_v52 }
 0x5d2   :  { %2071 = vmatpush3.msra.mxu1 %v1902_v53  ;;  %2048 = vmatprep.subr.mxu0 %v1872_v55 }
 0x5d3   :  { %2072 = vmatprep.subr.mxu1 %v1917_v56  ;;  %2049 = vmatpush3.msra.mxu0 %v1856_v57  ;;  %v1927_v56 = vld [vmem:[%s3114_s11] ss:$0 sm:$0xff] }
 0x5d4   :  { %2073 = vmatpush3.msra.mxu1 %v1901_v58  ;;  %2050 = vmatprep.subr.mxu0 %v1871_v59 }
 0x5d5   :  { %2074 = vmatprep.subr.mxu1 %v1916_v60  ;;  %2051 = vmatpush3.msra.mxu0 %v1855_v61 }
 0x5d6   :  { %2075 = vmatpush3.msra.mxu1 %v1900_v62  ;;  %2052 = vmatprep.subr.mxu0 %v1870_v63 }
 0x5d7   :  { %2076 = vmatprep.subr.mxu1 %v1915_v0  ;;  %2053 = vmatpush3.msra.mxu0 %v1854_v1 }
 0x5d8   :  { %2077 = vmatpush3.msra.mxu1 %v1899_v2  ;;  %2054 = vmatprep.subr.mxu0 %v1869_v5 }
 0x5d9   :  { %2078 = vmatprep.subr.mxu1 %v1914_v7  ;;  %2055 = vmatpush3.msra.mxu0 %v1853_v8 }
 0x5da   :  { %2079 = vmatpush3.msra.mxu1 %v1898_v9  ;;  %1519 = vmatmul.mubr.f32.vlgmr.msra.gmra.mxu0 %v1447_v10 }
 0x5db   :  { %2080 = vmatprep.subr.mxu1 %v1913_v11  ;;  %2172 = vmatprep.subr.mxu0 %v2238_v19 }
 0x5dc   :  { %2081 = vmatpush3.msra.mxu1 %v1897_v12  ;;  %2173 = vmatpush3.msra.mxu0 %v1925_v13 }
 0x5dd   :  { %2082 = vmatprep.subr.mxu1 %v1912_v14  ;;  %2174 = vmatprep.subr.mxu0 %v2238_v19 }
 0x5de   :  { %2083 = vmatpush3.msra.mxu1 %v1896_v28  ;;  %2175 = vmatpush3.msra.mxu0 %v1924_v16 }
 0x5df   :  { %2084 = vmatprep.subr.mxu1 %v1911_v54  ;;  %2176 = vmatprep.subr.mxu0 %v2238_v19 }
 0x5e0   :  { %2085 = vmatpush3.msra.mxu1 %v1895_v17  ;;  %2177 = vmatpush3.msra.mxu0 %v1923_v18 }
 0x5e1   :  { %2086 = vmatprep.subr.mxu1 %v1910_v20  ;;  %2178 = vmatprep.subr.mxu0 %v2238_v19 }
 0x5e2   :  { %2087 = vmatpush3.msra.mxu1 %v1894_v6  ;;  %2179 = vmatpush3.msra.mxu0 %v1922_v21 }
 0x5e3   :  { %2180 = vmatprep.mubr.msk.f32.mxu0 %vm2240_vm12, %v2238_v19  ;;  %2088 = vmatprep.subr.mxu1 %v1909_v22  ;;  %v1906_v19 = vld [vmem:[%s3113_s10 + $0x3e0] sm:$0xff]  ;;  %vm1788_vm12 = vcmask 123904  }
 0x5e4   :  { %2181 = vmatmul.mubr.msk.f32.vlgmr.msra.gmra.mxu0 %vm523_vm3, %v1634_v25  ;;  %2089 = vmatpush3.msra.mxu1 %v1893_v23 }
 0x5e5   :  { %2090 = vmatprep.subr.mxu1 %v1908_v27 }
 0x5e6   :  { %2091 = vmatpush3.msra.mxu1 %v1892_v29 }
 0x5e7   :  { %2092 = vmatprep.subr.mxu1 %v1907_v24 }
 0x5e8   :  { %2093 = vmatpush3.msra.mxu1 %v1891_v35 }
 0x5e9   :  { %2094 = vmatprep.subr.mxu1 %v1906_v19 }
 0x5ea   :  { %2095 = vmatpush3.msra.mxu1 %v1890_v4 }
 0x5eb   :  { %1704 = vmatmul.mubr.f32.vlgmr.msra.gmra.mxu1 %v1632_v15 }
 0x65f   :  { %v1264_v31 = vpop.f32.mrf.mxu1 }
 0x661   :  { %v2149_v3 = vpop.f32.mrf.mxu1 }
 0x66f   :  { %v1976_v32 = vpop.f32.mrf.mxu0 }
 0x671   :  { %v1977_v33 = vpop.f32.mrf.mxu0 }
 0x672   :  { %v1978_v26 = vadd.f32 %v1977_v33, %v1976_v32 }
 0x674   :  { %v1265_v46 = vadd.f32 %v1978_v26, %v1264_v31 }
 0x678   :  { %v1406_v34 = vpop.f32.mrf.mxu0 }
 0x67a   :  { %v2160_v36 = vpop.f32.mrf.mxu0 }
 0x680   :  { %v2016_v37 = vpop.f32.mrf.mxu1 }
 0x682   :  { %v2017_v38 = vpop.f32.mrf.mxu1 }
 0x683   :  { %v2018_v44 = vadd.f32 %v2017_v38, %v2016_v37 }
 0x685   :  { %v1337_v30 = vadd.f32 %v2018_v44, %v1265_v46 }
 0x687   :  { %v1407_v51 = vadd.f32 %v1406_v34, %v1337_v30 }
 0x68a   :  { %v1590_v39 = vpop.f32.mrf.mxu1 }
 0x68c   :  { %v2171_v40 = vpop.f32.mrf.mxu1 }
 0x69a   :  { %v2056_v41 = vpop.f32.mrf.mxu0 }
 0x69c   :  { %v2057_v42 = vpop.f32.mrf.mxu0 }
 0x69d   :  { %v2058_v50 = vadd.f32 %v2057_v42, %v2056_v41 }
 0x69f   :  { %v1591_v48 = vadd.f32 %v2058_v50, %v1590_v39 }
 0x6a1   :  { %v1594_v53 = vadd.f32 %v1591_v48, %v1407_v51 }
 0x6a4   :  { %v1775_v43 = vpop.f32.mrf.mxu0 }
 0x6a6   :  { %v2182_v45 = vpop.f32.mrf.mxu0 }
 0x6ab   :  { %v2096_v47 = vpop.f32.mrf.mxu1 }
 0x6ad   :  { %v2097_v49 = vpop.f32.mrf.mxu1 }
 0x6ae   :  { %v2098_v52 = vadd.f32 %v2097_v49, %v2096_v47 }
 0x6b0   :  { %v1776_v55 = vadd.f32 %v2098_v52, %v1775_v43 }
 0x6b2   :  { %v1779_v57 = vadd.f32 %v1776_v55, %v1594_v53 }
 0x6b4   :  { %v1787_v58 = vadd.f32 %v1927_v56, %v1779_v57 }
 0x6b6   :  { %1789 = vst.msk [vmem:[#allocation3] sm:$0x3] %vm1788_vm12, %v1787_v58 }
 0x6b7   :  { %2219 = shalt.err (!%p2216_p4)
}
 0x6b8   :  { %1799 = dma.vmem_to_hbm [thread:$0]  %s1797_s19, 32, %s3115_s12, [#allocation4]  }
 0x6b9   :  { %2228 = dma.done.wait [#allocation4], 32  }
 0x6ba   :  { %2229 = vsyncadd [#allocation4], 4294967264 }
 0x6bb   :  { %1803 = vsyncpa [#allocation4], 1 }

</bundles_post_ra>
